<compile_context>
chip_gen: v7x
topology: tpu7x:2x2x1
jax: 0.10.0
libtpu: 0.0.40
codegen_flags: <defaults>
</compile_context>

<pallas_src>
import math
import jax
import jax.numpy as jnp
from jax.experimental import pallas as pl
from jax.experimental.pallas import tpu as pltpu

B_J0 = 0.1      # b_j0 in the reference
BN_EPS = 1e-5


def snn_kernel(
    # ---- inputs (all whole-array VMEM blocks) ----
    x_ref,                                   # (T, B, D)  bf16  time-major input
    m1i, s1i, b1i, m2i, s2i, b2i, m3i,       # initial hidden state (f32)
    w1x_ref,                                 # (D, H)     bf16
    wh_ref,                                  # (11, H, H) bf16  hidden-size square weights
    w3x_ref,                                 # (H, O)     bf16
    w3t_ref,                                 # (2, O, O)  bf16  [w3tm_dense, w3tm_mem] (alpha folded)
    ph_ref,                                  # (12, H)    f32   tau biases (alpha folded) + BN affine
    po_ref,                                  # (3, O)     f32   [b3tm*a3, bn3_w, bn3_b]
    # ---- outputs ----
    out_ref,                                 # (T, B, O)  f32   raw mem3 per timestep
    m1o, s1o, b1o, m2o, s2o, b2o, m3o,       # final hidden state
):
    T = x_ref.shape[0]
    f32, bf16 = jnp.float32, jnp.bfloat16

    # ---- loop-invariant weights & parameter rows, hoisted above the loop ----
    w1x = w1x_ref[...]
    w1r, w2r = wh_ref[0], wh_ref[1]
    w1tm_d, w1tm_m = wh_ref[2], wh_ref[3]
    w1ta_d, w1ta_b = wh_ref[4], wh_ref[5]
    w2x = wh_ref[6]
    w2tm_d, w2tm_m = wh_ref[7], wh_ref[8]
    w2ta_d, w2ta_b = wh_ref[9], wh_ref[10]
    w3x = w3x_ref[...]
    w3tm_d, w3tm_m = w3t_ref[0], w3t_ref[1]

    b1tm, b1ta = ph_ref[0:1], ph_ref[1:2]
    b2tm, b2ta = ph_ref[2:3], ph_ref[3:4]
    bn1a_w, bn1a_b = ph_ref[4:5], ph_ref[5:6]
    bn1b_w, bn1b_b = ph_ref[6:7], ph_ref[7:8]
    bn2a_w, bn2a_b = ph_ref[8:9], ph_ref[9:10]
    bn2b_w, bn2b_b = ph_ref[10:11], ph_ref[11:12]
    b3tm, bn3_w, bn3_b = po_ref[0:1], po_ref[1:2], po_ref[2:3]

    def dot(a, w):
        # bf16 x bf16 MXU matmul, f32 accumulation.
        return jnp.dot(a.astype(bf16), w, preferred_element_type=f32)

    def batchnorm(y, w_row, b_row):
        # Training-mode BN over the batch axis, two-pass biased variance, f32.
        m = jnp.mean(y, axis=0, keepdims=True)
        yc = y - m
        var = jnp.mean(yc * yc, axis=0, keepdims=True)
        return yc * (jax.lax.rsqrt(var + BN_EPS) * w_row) + b_row

    def step(t, carry):
        mem1, spk1, bb1, mem2, spk2, bb2, mem3 = carry
        x_t = x_ref[t]                        # (B, D) bf16
        s1b = spk1.astype(bf16)               # OLD spk1 for both recurrent branches

        # Layer-1 feed-forward + recurrent branches; per-segment split dots
        # (no concatenation, no lane slicing).  Pre-BN linear biases cancel
        # exactly in training-mode BN and are omitted.
        dense1 = (batchnorm(dot(x_t, w1x), bn1a_w, bn1a_b)
                  + batchnorm(dot(s1b, w1r), bn1b_w, bn1b_b))
        bn2b_out = batchnorm(dot(s1b, w2r), bn2b_w, bn2b_b)   # uses OLD spk1

        # ---- layer 1: adaptive spiking neuron ----
        d1b = dense1.astype(bf16)
        tauM1 = jax.nn.sigmoid(dot(d1b, w1tm_d) + dot(mem1, w1tm_m) + b1tm)
        tauA1 = jax.nn.sigmoid(dot(d1b, w1ta_d) + dot(bb1, w1ta_b) + b1ta)
        bb1_n = tauA1 * bb1 + (1.0 - tauA1) * spk1
        mem1_n = mem1 + (dense1 - mem1) * tauM1
        spk1_n = (mem1_n - (B_J0 + 1.8 * bb1_n) > 0.0).astype(f32)
        mem1_n = (1.0 - spk1_n) * mem1_n

        # ---- layer 2 (feed-forward uses NEW spk1; recurrent branch used OLD spk1) ----
        dense2 = batchnorm(dot(spk1_n, w2x), bn2a_w, bn2a_b) + bn2b_out
        d2b = dense2.astype(bf16)
        tauM2 = jax.nn.sigmoid(dot(d2b, w2tm_d) + dot(mem2, w2tm_m) + b2tm)
        tauA2 = jax.nn.sigmoid(dot(d2b, w2ta_d) + dot(bb2, w2ta_b) + b2ta)
        bb2_n = tauA2 * bb2 + (1.0 - tauA2) * spk2
        mem2_n = mem2 + (dense2 - mem2) * tauM2
        spk2_n = (mem2_n - (B_J0 + 1.8 * bb2_n) > 0.0).astype(f32)
        mem2_n = (1.0 - spk2_n) * mem2_n

        # ---- output layer: leaky integrator, no spike ----
        dense3 = batchnorm(dot(spk2_n, w3x), bn3_w, bn3_b)
        tau3 = jax.nn.sigmoid(dot(dense3, w3tm_d) + dot(mem3, w3tm_m) + b3tm)
        mem3_n = (1.0 - tau3) * mem3 + dense3 * tau3

        # Raw membrane potential; log-softmax is applied once, vectorized,
        # outside the serial recurrence.
        out_ref[t] = mem3_n
        return (mem1_n, spk1_n, bb1_n, mem2_n, spk2_n, bb2_n, mem3_n)

    init = (m1i[...], s1i[...], b1i[...], m2i[...], s2i[...], b2i[...], m3i[...])

    # Manual 2x unroll: step t's store tail overlaps step t+1's head and the
    # per-iteration loop/branch overhead is halved (T is a static trip count).
    def step2(i, carry):
        return step(2 * i + 1, step(2 * i, carry))

    carry = jax.lax.fori_loop(0, T // 2, step2, init)
    if T % 2:                                 # static remainder (Python-level)
        carry = step(T - 1, carry)

    mem1, spk1, bb1, mem2, spk2, bb2, mem3 = carry
    m1o[...] = mem1
    s1o[...] = spk1
    b1o[...] = bb1
    m2o[...] = mem2
    s2o[...] = spk2
    b2o[...] = bb2
    m3o[...] = mem3


def pack_params(params, ninp, nhid, nout):
    """One-time (XLA-side) packing: bf16 weights, alphas folded into tau weights."""
    f32, bf16 = jnp.float32, jnp.bfloat16
    H, O = nhid, nout
    al = params["alphas"]
    a1m, a1a, a2m, a2a, a3 = (al[i] for i in range(5))

    w1tm, w1ta = params["w1tm"], params["w1ta"]   # (2H, H): [dense-rows; state-rows]
    w2tm, w2ta = params["w2tm"], params["w2ta"]
    w3tm = params["w3tm"]                         # (2O, O)

    w1x = params["w1x"].astype(bf16)              # (D, H)
    wh = jnp.stack([
        params["w1r"], params["w2r"],
        a1m * w1tm[:H], a1m * w1tm[H:],
        a1a * w1ta[:H], a1a * w1ta[H:],
        params["w2x"],
        a2m * w2tm[:H], a2m * w2tm[H:],
        a2a * w2ta[:H], a2a * w2ta[H:],
    ]).astype(bf16)                               # (11, H, H)
    w3x = params["w3x"].astype(bf16)              # (H, O)
    w3t = jnp.stack([a3 * w3tm[:O], a3 * w3tm[O:]]).astype(bf16)   # (2, O, O)

    bh, bo = params["bias_h"], params["bias_o"]
    bnh, bno = params["bn_h"], params["bn_o"]
    # Pre-BN linear biases (layer{1,2}_{x,r}, layer3_x) are constant per-feature
    # shifts of every batch row; training-mode BN subtracts the batch mean, so
    # they cancel exactly and are not passed to the kernel.
    ph = jnp.stack([
        a1m * bh[2], a1a * bh[3],                 # layer1 tauM / tauAdp biases (alpha folded)
        a2m * bh[6], a2a * bh[7],                 # layer2 tauM / tauAdp biases
        bnh[0], bnh[1],                           # bn1a weight / bias
        bnh[2], bnh[3],                           # bn1b
        bnh[4], bnh[5],                           # bn2a
        bnh[6], bnh[7],                           # bn2b
    ]).astype(f32)                                # (12, H)
    po = jnp.stack([a3 * bo[1], bno[0], bno[1]]).astype(f32)       # (3, O)
    return (w1x, wh, w3x, w3t, ph, po)


def seq_model_forward(x_btd, hidden, params):
    """x_btd: (B, T, ninp) like the PyTorch module.

    Returns (outputs, final_state, recon_loss) where `outputs` is the
    (T, B, nout) stack of per-timestep log-softmax tensors."""
    B, T, D = x_btd.shape
    H = params["w1r"].shape[0]
    O = params["w3x"].shape[1]
    # time-major + bf16 once in the wrapper: halves the input slab and removes
    # the per-step LHS cast for the first matmul.
    x_tbd = jnp.transpose(x_btd, (1, 0, 2)).astype(jnp.bfloat16)

    packed = pack_params(params, D, H, O)

    vmem = pl.BlockSpec(memory_space=pltpu.MemorySpace.VMEM)
    out_shape = (
        jax.ShapeDtypeStruct((T, B, O), jnp.float32),
        *[jax.ShapeDtypeStruct((B, H), jnp.float32) for _ in range(6)],
        jax.ShapeDtypeStruct((B, O), jnp.float32),
    )

    cost = pl.CostEstimate(
        flops=int(2 * T * B * (D * H + 11 * H * H + H * O + 2 * O * O)),
        transcendentals=int(T * (B * (4 * H + O) + 4 * H + O)),
        bytes_accessed=int(T * B * D * 2 + T * B * O * 4
                           + 2 * (6 * B * H + B * O) * 4
                           + (D * H + 11 * H * H + H * O + 2 * O * O) * 2
                           + (12 * H + 3 * O) * 4),
    )

    fn = pl.pallas_call(
        snn_kernel,
        out_shape=out_shape,
        in_specs=[vmem] * (1 + 7 + len(packed)),   # everything resident in VMEM
        out_specs=[vmem] * 8,
        cost_estimate=cost,
    )
    outs = fn(x_tbd, *hidden, *packed)

    # Vectorized log-softmax over the whole (T,B,O) slab as one tiny XLA op,
    # instead of per-timestep inside the serial recurrence.
    outputs = jax.nn.log_softmax(outs[0], axis=-1)
    final_state = tuple(outs[1:])
    recon_loss = jnp.zeros((1,), jnp.float32)
    return outputs, final_state, recon_loss


def init_params(key, ninp, nhid, nout):
    H, O = nhid, nout
    ks = jax.random.split(key, 12)

    def xavier(k, shape):
        std = math.sqrt(2.0 / (shape[0] + shape[1]))
        return std * jax.random.normal(k, shape, jnp.float32)

    params = dict(
        w1x=xavier(ks[0], (ninp, H)),
        w1r=jax.random.orthogonal(ks[1], H).astype(jnp.float32),
        w1tm=xavier(ks[2], (2 * H, H)),
        w1ta=xavier(ks[3], (2 * H, H)),
        w2x=xavier(ks[4], (H, H)),
        w2r=jax.random.orthogonal(ks[5], H).astype(jnp.float32),
        w2tm=xavier(ks[6], (2 * H, H)),
        w2ta=xavier(ks[7], (2 * H, H)),
        w3x=xavier(ks[8], (H, O)),
        w3tm=xavier(ks[9], (2 * O, O)),
    )
    # biases: most are zero-initialized in the reference; layer*_r keep the
    # default nn.Linear bias init (uniform(-1/sqrt(H), 1/sqrt(H))).  The pre-BN
    # biases are kept in the param dict for faithfulness but cancel under BN.
    bias_h = jnp.zeros((8, H), jnp.float32)       # [b1x,b1r,b1tm,b1ta,b2x,b2r,b2tm,b2ta]
    bnd = 1.0 / math.sqrt(H)
    bias_h = bias_h.at[1].set(jax.random.uniform(ks[10], (H,), jnp.float32, -bnd, bnd))
    bias_h = bias_h.at[5].set(jax.random.uniform(ks[11], (H,), jnp.float32, -bnd, bnd))
    params["bias_h"] = bias_h
    params["bias_o"] = jnp.zeros((2, O), jnp.float32)                 # [b3x, b3tm]
    # BN affine: weight = 0.1, bias = 0 (as set in SNN.__init__)
    params["bn_h"] = jnp.tile(
        jnp.stack([jnp.full((H,), 0.1, jnp.float32), jnp.zeros((H,), jnp.float32)]), (4, 1)
    )                                                                  # [1a_w,1a_b,1b_w,1b_b,2a_w,2a_b,2b_w,2b_b]
    params["bn_o"] = jnp.stack([jnp.full((O,), 0.1, jnp.float32), jnp.zeros((O,), jnp.float32)])
    params["alphas"] = jnp.full((8,), 1.5, jnp.float32)                # sigmoid_beta alphas (5 used)
    return params


if __name__ == "__main__":
    # Small shapes; T = 100 (> 99) selects the per-timestep path of the reference.
    B, T, NINP, NHID, NOUT = 4, 100, 16, 32, 8

    key = jax.random.PRNGKey(0)
    k_x, k_p, k_h1, k_h2 = jax.random.split(key, 4)

    params = init_params(k_p, NINP, NHID, NOUT)
    x = jax.random.normal(k_x, (B, T, NINP), jnp.float32)

    # init_hidden(bsz): (uniform, zeros, b_j0, uniform, zeros, b_j0, zeros)
    hidden = (
        jax.random.uniform(k_h1, (B, NHID), jnp.float32),
        jnp.zeros((B, NHID), jnp.float32),
        jnp.full((B, NHID), B_J0, jnp.float32),
        jax.random.uniform(k_h2, (B, NHID), jnp.float32),
        jnp.zeros((B, NHID), jnp.float32),
        jnp.full((B, NHID), B_J0, jnp.float32),
        jnp.zeros((B, NOUT), jnp.float32),
    )

    outputs, final_state, recon_loss = seq_model_forward(x, hidden, params)
    jax.block_until_ready((outputs, final_state, recon_loss))

    assert outputs.shape == (T, B, NOUT)
    assert len(final_state) == 7 and final_state[0].shape == (B, NHID) and final_state[6].shape == (B, NOUT)
    assert bool(jnp.all(jnp.isfinite(outputs)))
    assert all(bool(jnp.all(jnp.isfinite(s))) for s in final_state)
    # log-softmax rows should sum to ~1 in prob space
    assert bool(jnp.allclose(jnp.sum(jnp.exp(outputs), axis=-1), 1.0, atol=1e-4))

    print("KERNEL_OK")
</pallas_src>

<mosaic_0001>
module attributes {stable_mosaic.version = 11 : i64} {
  func.func @snn_kernel(%arg0: memref<100x4x16xbf16, #tpu.memory_space<vmem>>, %arg1: memref<4x32xf32, #tpu.memory_space<vmem>>, %arg2: memref<4x32xf32, #tpu.memory_space<vmem>>, %arg3: memref<4x32xf32, #tpu.memory_space<vmem>>, %arg4: memref<4x32xf32, #tpu.memory_space<vmem>>, %arg5: memref<4x32xf32, #tpu.memory_space<vmem>>, %arg6: memref<4x32xf32, #tpu.memory_space<vmem>>, %arg7: memref<4x8xf32, #tpu.memory_space<vmem>>, %arg8: memref<16x32xbf16, #tpu.memory_space<vmem>>, %arg9: memref<11x32x32xbf16, #tpu.memory_space<vmem>>, %arg10: memref<32x8xbf16, #tpu.memory_space<vmem>>, %arg11: memref<2x8x8xbf16, #tpu.memory_space<vmem>>, %arg12: memref<12x32xf32, #tpu.memory_space<vmem>>, %arg13: memref<3x8xf32, #tpu.memory_space<vmem>>, %arg14: memref<100x4x8xf32, #tpu.memory_space<vmem>>, %arg15: memref<4x32xf32, #tpu.memory_space<vmem>>, %arg16: memref<4x32xf32, #tpu.memory_space<vmem>>, %arg17: memref<4x32xf32, #tpu.memory_space<vmem>>, %arg18: memref<4x32xf32, #tpu.memory_space<vmem>>, %arg19: memref<4x32xf32, #tpu.memory_space<vmem>>, %arg20: memref<4x32xf32, #tpu.memory_space<vmem>>, %arg21: memref<4x8xf32, #tpu.memory_space<vmem>>) attributes {dimension_semantics = [], scalar_prefetch = 0 : i64, scratch_operands = 0 : i64, tpu.core_type = #tpu.core_type<tc>} {
    %c0 = arith.constant 0 : index
    %c0_0 = arith.constant 0 : index
    %0 = vector.load %arg8[%c0, %c0_0] : memref<16x32xbf16, #tpu.memory_space<vmem>>, vector<16x32xbf16>
    %c0_1 = arith.constant 0 : index
    %c0_2 = arith.constant 0 : index
    %c0_3 = arith.constant 0 : index
    %1 = vector.load %arg9[%c0_1, %c0_2, %c0_3] : memref<11x32x32xbf16, #tpu.memory_space<vmem>>, vector<1x32x32xbf16>
    %2 = vector.shape_cast %1 : vector<1x32x32xbf16> to vector<32x32xbf16>
    %c1 = arith.constant 1 : index
    %c0_4 = arith.constant 0 : index
    %c0_5 = arith.constant 0 : index
    %3 = vector.load %arg9[%c1, %c0_4, %c0_5] : memref<11x32x32xbf16, #tpu.memory_space<vmem>>, vector<1x32x32xbf16>
    %4 = vector.shape_cast %3 : vector<1x32x32xbf16> to vector<32x32xbf16>
    %c2 = arith.constant 2 : index
    %c0_6 = arith.constant 0 : index
    %c0_7 = arith.constant 0 : index
    %5 = vector.load %arg9[%c2, %c0_6, %c0_7] : memref<11x32x32xbf16, #tpu.memory_space<vmem>>, vector<1x32x32xbf16>
    %6 = vector.shape_cast %5 : vector<1x32x32xbf16> to vector<32x32xbf16>
    %c3 = arith.constant 3 : index
    %c0_8 = arith.constant 0 : index
    %c0_9 = arith.constant 0 : index
    %7 = vector.load %arg9[%c3, %c0_8, %c0_9] : memref<11x32x32xbf16, #tpu.memory_space<vmem>>, vector<1x32x32xbf16>
    %8 = vector.shape_cast %7 : vector<1x32x32xbf16> to vector<32x32xbf16>
    %c4 = arith.constant 4 : index
    %c0_10 = arith.constant 0 : index
    %c0_11 = arith.constant 0 : index
    %9 = vector.load %arg9[%c4, %c0_10, %c0_11] : memref<11x32x32xbf16, #tpu.memory_space<vmem>>, vector<1x32x32xbf16>
    %10 = vector.shape_cast %9 : vector<1x32x32xbf16> to vector<32x32xbf16>
    %c5 = arith.constant 5 : index
    %c0_12 = arith.constant 0 : index
    %c0_13 = arith.constant 0 : index
    %11 = vector.load %arg9[%c5, %c0_12, %c0_13] : memref<11x32x32xbf16, #tpu.memory_space<vmem>>, vector<1x32x32xbf16>
    %12 = vector.shape_cast %11 : vector<1x32x32xbf16> to vector<32x32xbf16>
    %c6 = arith.constant 6 : index
    %c0_14 = arith.constant 0 : index
    %c0_15 = arith.constant 0 : index
    %13 = vector.load %arg9[%c6, %c0_14, %c0_15] : memref<11x32x32xbf16, #tpu.memory_space<vmem>>, vector<1x32x32xbf16>
    %14 = vector.shape_cast %13 : vector<1x32x32xbf16> to vector<32x32xbf16>
    %c7 = arith.constant 7 : index
    %c0_16 = arith.constant 0 : index
    %c0_17 = arith.constant 0 : index
    %15 = vector.load %arg9[%c7, %c0_16, %c0_17] : memref<11x32x32xbf16, #tpu.memory_space<vmem>>, vector<1x32x32xbf16>
    %16 = vector.shape_cast %15 : vector<1x32x32xbf16> to vector<32x32xbf16>
    %c8 = arith.constant 8 : index
    %c0_18 = arith.constant 0 : index
    %c0_19 = arith.constant 0 : index
    %17 = vector.load %arg9[%c8, %c0_18, %c0_19] : memref<11x32x32xbf16, #tpu.memory_space<vmem>>, vector<1x32x32xbf16>
    %18 = vector.shape_cast %17 : vector<1x32x32xbf16> to vector<32x32xbf16>
    %c9 = arith.constant 9 : index
    %c0_20 = arith.constant 0 : index
    %c0_21 = arith.constant 0 : index
    %19 = vector.load %arg9[%c9, %c0_20, %c0_21] : memref<11x32x32xbf16, #tpu.memory_space<vmem>>, vector<1x32x32xbf16>
    %20 = vector.shape_cast %19 : vector<1x32x32xbf16> to vector<32x32xbf16>
    %c10 = arith.constant 10 : index
    %c0_22 = arith.constant 0 : index
    %c0_23 = arith.constant 0 : index
    %21 = vector.load %arg9[%c10, %c0_22, %c0_23] : memref<11x32x32xbf16, #tpu.memory_space<vmem>>, vector<1x32x32xbf16>
    %22 = vector.shape_cast %21 : vector<1x32x32xbf16> to vector<32x32xbf16>
    %c0_24 = arith.constant 0 : index
    %c0_25 = arith.constant 0 : index
    %23 = vector.load %arg10[%c0_24, %c0_25] : memref<32x8xbf16, #tpu.memory_space<vmem>>, vector<32x8xbf16>
    %c0_26 = arith.constant 0 : index
    %c0_27 = arith.constant 0 : index
    %c0_28 = arith.constant 0 : index
    %24 = vector.load %arg11[%c0_26, %c0_27, %c0_28] : memref<2x8x8xbf16, #tpu.memory_space<vmem>>, vector<1x8x8xbf16>
    %25 = vector.shape_cast %24 : vector<1x8x8xbf16> to vector<8x8xbf16>
    %c1_29 = arith.constant 1 : index
    %c0_30 = arith.constant 0 : index
    %c0_31 = arith.constant 0 : index
    %26 = vector.load %arg11[%c1_29, %c0_30, %c0_31] : memref<2x8x8xbf16, #tpu.memory_space<vmem>>, vector<1x8x8xbf16>
    %27 = vector.shape_cast %26 : vector<1x8x8xbf16> to vector<8x8xbf16>
    %c0_32 = arith.constant 0 : index
    %c0_33 = arith.constant 0 : index
    %28 = vector.load %arg12[%c0_32, %c0_33] : memref<12x32xf32, #tpu.memory_space<vmem>>, vector<1x32xf32>
    %c1_34 = arith.constant 1 : index
    %c0_35 = arith.constant 0 : index
    %29 = vector.load %arg12[%c1_34, %c0_35] : memref<12x32xf32, #tpu.memory_space<vmem>>, vector<1x32xf32>
    %c2_36 = arith.constant 2 : index
    %c0_37 = arith.constant 0 : index
    %30 = vector.load %arg12[%c2_36, %c0_37] : memref<12x32xf32, #tpu.memory_space<vmem>>, vector<1x32xf32>
    %c3_38 = arith.constant 3 : index
    %c0_39 = arith.constant 0 : index
    %31 = vector.load %arg12[%c3_38, %c0_39] : memref<12x32xf32, #tpu.memory_space<vmem>>, vector<1x32xf32>
    %c4_40 = arith.constant 4 : index
    %c0_41 = arith.constant 0 : index
    %32 = vector.load %arg12[%c4_40, %c0_41] : memref<12x32xf32, #tpu.memory_space<vmem>>, vector<1x32xf32>
    %c5_42 = arith.constant 5 : index
    %c0_43 = arith.constant 0 : index
    %33 = vector.load %arg12[%c5_42, %c0_43] : memref<12x32xf32, #tpu.memory_space<vmem>>, vector<1x32xf32>
    %c6_44 = arith.constant 6 : index
    %c0_45 = arith.constant 0 : index
    %34 = vector.load %arg12[%c6_44, %c0_45] : memref<12x32xf32, #tpu.memory_space<vmem>>, vector<1x32xf32>
    %c7_46 = arith.constant 7 : index
    %c0_47 = arith.constant 0 : index
    %35 = vector.load %arg12[%c7_46, %c0_47] : memref<12x32xf32, #tpu.memory_space<vmem>>, vector<1x32xf32>
    %c8_48 = arith.constant 8 : index
    %c0_49 = arith.constant 0 : index
    %36 = vector.load %arg12[%c8_48, %c0_49] : memref<12x32xf32, #tpu.memory_space<vmem>>, vector<1x32xf32>
    %c9_50 = arith.constant 9 : index
    %c0_51 = arith.constant 0 : index
    %37 = vector.load %arg12[%c9_50, %c0_51] : memref<12x32xf32, #tpu.memory_space<vmem>>, vector<1x32xf32>
    %c10_52 = arith.constant 10 : index
    %c0_53 = arith.constant 0 : index
    %38 = vector.load %arg12[%c10_52, %c0_53] : memref<12x32xf32, #tpu.memory_space<vmem>>, vector<1x32xf32>
    %c11 = arith.constant 11 : index
    %c0_54 = arith.constant 0 : index
    %39 = vector.load %arg12[%c11, %c0_54] : memref<12x32xf32, #tpu.memory_space<vmem>>, vector<1x32xf32>
    %c0_55 = arith.constant 0 : index
    %c0_56 = arith.constant 0 : index
    %40 = vector.load %arg13[%c0_55, %c0_56] : memref<3x8xf32, #tpu.memory_space<vmem>>, vector<1x8xf32>
    %c1_57 = arith.constant 1 : index
    %c0_58 = arith.constant 0 : index
    %41 = vector.load %arg13[%c1_57, %c0_58] : memref<3x8xf32, #tpu.memory_space<vmem>>, vector<1x8xf32>
    %c2_59 = arith.constant 2 : index
    %c0_60 = arith.constant 0 : index
    %42 = vector.load %arg13[%c2_59, %c0_60] : memref<3x8xf32, #tpu.memory_space<vmem>>, vector<1x8xf32>
    %c0_61 = arith.constant 0 : index
    %c0_62 = arith.constant 0 : index
    %43 = vector.load %arg1[%c0_61, %c0_62] : memref<4x32xf32, #tpu.memory_space<vmem>>, vector<4x32xf32>
    %c0_63 = arith.constant 0 : index
    %c0_64 = arith.constant 0 : index
    %44 = vector.load %arg2[%c0_63, %c0_64] : memref<4x32xf32, #tpu.memory_space<vmem>>, vector<4x32xf32>
    %c0_65 = arith.constant 0 : index
    %c0_66 = arith.constant 0 : index
    %45 = vector.load %arg3[%c0_65, %c0_66] : memref<4x32xf32, #tpu.memory_space<vmem>>, vector<4x32xf32>
    %c0_67 = arith.constant 0 : index
    %c0_68 = arith.constant 0 : index
    %46 = vector.load %arg4[%c0_67, %c0_68] : memref<4x32xf32, #tpu.memory_space<vmem>>, vector<4x32xf32>
    %c0_69 = arith.constant 0 : index
    %c0_70 = arith.constant 0 : index
    %47 = vector.load %arg5[%c0_69, %c0_70] : memref<4x32xf32, #tpu.memory_space<vmem>>, vector<4x32xf32>
    %c0_71 = arith.constant 0 : index
    %c0_72 = arith.constant 0 : index
    %48 = vector.load %arg6[%c0_71, %c0_72] : memref<4x32xf32, #tpu.memory_space<vmem>>, vector<4x32xf32>
    %c0_73 = arith.constant 0 : index
    %c0_74 = arith.constant 0 : index
    %49 = vector.load %arg7[%c0_73, %c0_74] : memref<4x8xf32, #tpu.memory_space<vmem>>, vector<4x8xf32>
    %c0_i32 = arith.constant 0 : i32
    %c50_i32 = arith.constant 50 : i32
    %50 = arith.addi %c0_i32, %c50_i32 : i32
    %c1_i32 = arith.constant 1 : i32
    %51:7 = scf.for %arg22 = %c0_i32 to %50 step %c1_i32 iter_args(%arg23 = %43, %arg24 = %44, %arg25 = %45, %arg26 = %46, %arg27 = %47, %arg28 = %48, %arg29 = %49) -> (vector<4x32xf32>, vector<4x32xf32>, vector<4x32xf32>, vector<4x32xf32>, vector<4x32xf32>, vector<4x32xf32>, vector<4x8xf32>)  : i32 {
      %c2_i32 = arith.constant 2 : i32
      %59 = arith.muli %c2_i32, %arg22 : i32
      %c1_i32_90 = arith.constant 1 : i32
      %60 = arith.addi %59, %c1_i32_90 : i32
      %c2_i32_91 = arith.constant 2 : i32
      %61 = arith.muli %c2_i32_91, %arg22 : i32
      %62 = arith.index_cast %61 : i32 to index
      %c0_92 = arith.constant 0 : index
      %c0_93 = arith.constant 0 : index
      %63 = vector.load %arg0[%62, %c0_92, %c0_93] : memref<100x4x16xbf16, #tpu.memory_space<vmem>>, vector<1x4x16xbf16>
      %64 = vector.shape_cast %63 : vector<1x4x16xbf16> to vector<4x16xbf16>
      %65 = arith.truncf %arg24 : vector<4x32xf32> to vector<4x32xbf16>
      %cst = arith.constant dense<0.000000e+00> : vector<4x32xf32>
      %66 = tpu.matmul %64, %0, %cst {dimension_numbers = #tpu.dot_dimension_numbers<[1], [0], [0], [1], [0, 0, 1, 1], [], []>} : vector<4x16xbf16>, vector<16x32xbf16>, vector<4x32xf32> -> vector<4x32xf32>
      %cst_94 = arith.constant dense<0.000000e+00> : vector<32xf32>
      %67 = vector.multi_reduction <add>, %66, %cst_94 [0] : vector<4x32xf32> to vector<32xf32>
      %68 = vector.shape_cast %67 : vector<32xf32> to vector<1x32xf32>
      %cst_95 = arith.constant 4.000000e+00 : f32
      %69 = vector.broadcast %cst_95 : f32 to vector<1x32xf32>
      %70 = arith.divf %68, %69 : vector<1x32xf32>
      %71 = vector.broadcast %70 : vector<1x32xf32> to vector<4x32xf32>
      %72 = arith.subf %66, %71 : vector<4x32xf32>
      %73 = arith.mulf %72, %72 : vector<4x32xf32>
      %cst_96 = arith.constant dense<0.000000e+00> : vector<32xf32>
      %74 = vector.multi_reduction <add>, %73, %cst_96 [0] : vector<4x32xf32> to vector<32xf32>
      %75 = vector.shape_cast %74 : vector<32xf32> to vector<1x32xf32>
      %cst_97 = arith.constant 4.000000e+00 : f32
      %76 = vector.broadcast %cst_97 : f32 to vector<1x32xf32>
      %77 = arith.divf %75, %76 : vector<1x32xf32>
      %cst_98 = arith.constant 9.99999974E-6 : f32
      %78 = vector.broadcast %cst_98 : f32 to vector<1x32xf32>
      %79 = arith.addf %77, %78 : vector<1x32xf32>
      %80 = math.rsqrt %79 : vector<1x32xf32>
      %81 = arith.mulf %80, %32 : vector<1x32xf32>
      %82 = vector.broadcast %81 : vector<1x32xf32> to vector<4x32xf32>
      %83 = arith.mulf %72, %82 : vector<4x32xf32>
      %84 = vector.broadcast %33 : vector<1x32xf32> to vector<4x32xf32>
      %85 = arith.addf %83, %84 : vector<4x32xf32>
      %cst_99 = arith.constant dense<0.000000e+00> : vector<4x32xf32>
      %86 = tpu.matmul %65, %2, %cst_99 {dimension_numbers = #tpu.dot_dimension_numbers<[1], [0], [0], [1], [0, 0, 1, 1], [], []>} : vector<4x32xbf16>, vector<32x32xbf16>, vector<4x32xf32> -> vector<4x32xf32>
      %cst_100 = arith.constant dense<0.000000e+00> : vector<32xf32>
      %87 = vector.multi_reduction <add>, %86, %cst_100 [0] : vector<4x32xf32> to vector<32xf32>
      %88 = vector.shape_cast %87 : vector<32xf32> to vector<1x32xf32>
      %cst_101 = arith.constant 4.000000e+00 : f32
      %89 = vector.broadcast %cst_101 : f32 to vector<1x32xf32>
      %90 = arith.divf %88, %89 : vector<1x32xf32>
      %91 = vector.broadcast %90 : vector<1x32xf32> to vector<4x32xf32>
      %92 = arith.subf %86, %91 : vector<4x32xf32>
      %93 = arith.mulf %92, %92 : vector<4x32xf32>
      %cst_102 = arith.constant dense<0.000000e+00> : vector<32xf32>
      %94 = vector.multi_reduction <add>, %93, %cst_102 [0] : vector<4x32xf32> to vector<32xf32>
      %95 = vector.shape_cast %94 : vector<32xf32> to vector<1x32xf32>
      %cst_103 = arith.constant 4.000000e+00 : f32
      %96 = vector.broadcast %cst_103 : f32 to vector<1x32xf32>
      %97 = arith.divf %95, %96 : vector<1x32xf32>
      %cst_104 = arith.constant 9.99999974E-6 : f32
      %98 = vector.broadcast %cst_104 : f32 to vector<1x32xf32>
      %99 = arith.addf %97, %98 : vector<1x32xf32>
      %100 = math.rsqrt %99 : vector<1x32xf32>
      %101 = arith.mulf %100, %34 : vector<1x32xf32>
      %102 = vector.broadcast %101 : vector<1x32xf32> to vector<4x32xf32>
      %103 = arith.mulf %92, %102 : vector<4x32xf32>
      %104 = vector.broadcast %35 : vector<1x32xf32> to vector<4x32xf32>
      %105 = arith.addf %103, %104 : vector<4x32xf32>
      %106 = arith.addf %85, %105 : vector<4x32xf32>
      %cst_105 = arith.constant dense<0.000000e+00> : vector<4x32xf32>
      %107 = tpu.matmul %65, %4, %cst_105 {dimension_numbers = #tpu.dot_dimension_numbers<[1], [0], [0], [1], [0, 0, 1, 1], [], []>} : vector<4x32xbf16>, vector<32x32xbf16>, vector<4x32xf32> -> vector<4x32xf32>
      %cst_106 = arith.constant dense<0.000000e+00> : vector<32xf32>
      %108 = vector.multi_reduction <add>, %107, %cst_106 [0] : vector<4x32xf32> to vector<32xf32>
      %109 = vector.shape_cast %108 : vector<32xf32> to vector<1x32xf32>
      %cst_107 = arith.constant 4.000000e+00 : f32
      %110 = vector.broadcast %cst_107 : f32 to vector<1x32xf32>
      %111 = arith.divf %109, %110 : vector<1x32xf32>
      %112 = vector.broadcast %111 : vector<1x32xf32> to vector<4x32xf32>
      %113 = arith.subf %107, %112 : vector<4x32xf32>
      %114 = arith.mulf %113, %113 : vector<4x32xf32>
      %cst_108 = arith.constant dense<0.000000e+00> : vector<32xf32>
      %115 = vector.multi_reduction <add>, %114, %cst_108 [0] : vector<4x32xf32> to vector<32xf32>
      %116 = vector.shape_cast %115 : vector<32xf32> to vector<1x32xf32>
      %cst_109 = arith.constant 4.000000e+00 : f32
      %117 = vector.broadcast %cst_109 : f32 to vector<1x32xf32>
      %118 = arith.divf %116, %117 : vector<1x32xf32>
      %cst_110 = arith.constant 9.99999974E-6 : f32
      %119 = vector.broadcast %cst_110 : f32 to vector<1x32xf32>
      %120 = arith.addf %118, %119 : vector<1x32xf32>
      %121 = math.rsqrt %120 : vector<1x32xf32>
      %122 = arith.mulf %121, %38 : vector<1x32xf32>
      %123 = vector.broadcast %122 : vector<1x32xf32> to vector<4x32xf32>
      %124 = arith.mulf %113, %123 : vector<4x32xf32>
      %125 = vector.broadcast %39 : vector<1x32xf32> to vector<4x32xf32>
      %126 = arith.addf %124, %125 : vector<4x32xf32>
      %127 = arith.truncf %106 : vector<4x32xf32> to vector<4x32xbf16>
      %cst_111 = arith.constant dense<0.000000e+00> : vector<4x32xf32>
      %128 = tpu.matmul %127, %6, %cst_111 {dimension_numbers = #tpu.dot_dimension_numbers<[1], [0], [0], [1], [0, 0, 1, 1], [], []>} : vector<4x32xbf16>, vector<32x32xbf16>, vector<4x32xf32> -> vector<4x32xf32>
      %129 = arith.truncf %arg23 : vector<4x32xf32> to vector<4x32xbf16>
      %cst_112 = arith.constant dense<0.000000e+00> : vector<4x32xf32>
      %130 = tpu.matmul %129, %8, %cst_112 {dimension_numbers = #tpu.dot_dimension_numbers<[1], [0], [0], [1], [0, 0, 1, 1], [], []>} : vector<4x32xbf16>, vector<32x32xbf16>, vector<4x32xf32> -> vector<4x32xf32>
      %131 = arith.addf %128, %130 : vector<4x32xf32>
      %132 = vector.broadcast %28 : vector<1x32xf32> to vector<4x32xf32>
      %133 = arith.addf %131, %132 : vector<4x32xf32>
      %134 = arith.negf %133 : vector<4x32xf32>
      %135 = math.exp %134 : vector<4x32xf32>
      %cst_113 = arith.constant 1.000000e+00 : f32
      %136 = vector.broadcast %cst_113 : f32 to vector<4x32xf32>
      %137 = arith.addf %136, %135 : vector<4x32xf32>
      %138 = arith.divf %136, %137 : vector<4x32xf32>
      %cst_114 = arith.constant dense<0.000000e+00> : vector<4x32xf32>
      %139 = tpu.matmul %127, %10, %cst_114 {dimension_numbers = #tpu.dot_dimension_numbers<[1], [0], [0], [1], [0, 0, 1, 1], [], []>} : vector<4x32xbf16>, vector<32x32xbf16>, vector<4x32xf32> -> vector<4x32xf32>
      %140 = arith.truncf %arg25 : vector<4x32xf32> to vector<4x32xbf16>
      %cst_115 = arith.constant dense<0.000000e+00> : vector<4x32xf32>
      %141 = tpu.matmul %140, %12, %cst_115 {dimension_numbers = #tpu.dot_dimension_numbers<[1], [0], [0], [1], [0, 0, 1, 1], [], []>} : vector<4x32xbf16>, vector<32x32xbf16>, vector<4x32xf32> -> vector<4x32xf32>
      %142 = arith.addf %139, %141 : vector<4x32xf32>
      %143 = vector.broadcast %29 : vector<1x32xf32> to vector<4x32xf32>
      %144 = arith.addf %142, %143 : vector<4x32xf32>
      %145 = arith.negf %144 : vector<4x32xf32>
      %146 = math.exp %145 : vector<4x32xf32>
      %cst_116 = arith.constant 1.000000e+00 : f32
      %147 = vector.broadcast %cst_116 : f32 to vector<4x32xf32>
      %148 = arith.addf %147, %146 : vector<4x32xf32>
      %149 = arith.divf %147, %148 : vector<4x32xf32>
      %150 = arith.mulf %149, %arg25 : vector<4x32xf32>
      %cst_117 = arith.constant 1.000000e+00 : f32
      %151 = vector.broadcast %cst_117 : f32 to vector<4x32xf32>
      %152 = arith.subf %151, %149 : vector<4x32xf32>
      %153 = arith.mulf %152, %arg24 : vector<4x32xf32>
      %154 = arith.addf %150, %153 : vector<4x32xf32>
      %155 = arith.subf %106, %arg23 : vector<4x32xf32>
      %156 = arith.mulf %155, %138 : vector<4x32xf32>
      %157 = arith.addf %arg23, %156 : vector<4x32xf32>
      %cst_118 = arith.constant 1.800000e+00 : f32
      %158 = vector.broadcast %cst_118 : f32 to vector<4x32xf32>
      %159 = arith.mulf %158, %154 : vector<4x32xf32>
      %cst_119 = arith.constant 1.000000e-01 : f32
      %160 = vector.broadcast %cst_119 : f32 to vector<4x32xf32>
      %161 = arith.addf %160, %159 : vector<4x32xf32>
      %162 = arith.subf %157, %161 : vector<4x32xf32>
      %cst_120 = arith.constant 0.000000e+00 : f32
      %163 = vector.broadcast %cst_120 : f32 to vector<4x32xf32>
      %164 = arith.cmpf ogt, %162, %163 : vector<4x32xf32>
      %165 = arith.extui %164 : vector<4x32xi1> to vector<4x32xi32>
      %166 = arith.sitofp %165 : vector<4x32xi32> to vector<4x32xf32>
      %cst_121 = arith.constant 1.000000e+00 : f32
      %167 = vector.broadcast %cst_121 : f32 to vector<4x32xf32>
      %168 = arith.subf %167, %166 : vector<4x32xf32>
      %169 = arith.mulf %168, %157 : vector<4x32xf32>
      %170 = arith.truncf %166 : vector<4x32xf32> to vector<4x32xbf16>
      %cst_122 = arith.constant dense<0.000000e+00> : vector<4x32xf32>
      %171 = tpu.matmul %170, %14, %cst_122 {dimension_numbers = #tpu.dot_dimension_numbers<[1], [0], [0], [1], [0, 0, 1, 1], [], []>} : vector<4x32xbf16>, vector<32x32xbf16>, vector<4x32xf32> -> vector<4x32xf32>
      %cst_123 = arith.constant dense<0.000000e+00> : vector<32xf32>
      %172 = vector.multi_reduction <add>, %171, %cst_123 [0] : vector<4x32xf32> to vector<32xf32>
      %173 = vector.shape_cast %172 : vector<32xf32> to vector<1x32xf32>
      %cst_124 = arith.constant 4.000000e+00 : f32
      %174 = vector.broadcast %cst_124 : f32 to vector<1x32xf32>
      %175 = arith.divf %173, %174 : vector<1x32xf32>
      %176 = vector.broadcast %175 : vector<1x32xf32> to vector<4x32xf32>
      %177 = arith.subf %171, %176 : vector<4x32xf32>
      %178 = arith.mulf %177, %177 : vector<4x32xf32>
      %cst_125 = arith.constant dense<0.000000e+00> : vector<32xf32>
      %179 = vector.multi_reduction <add>, %178, %cst_125 [0] : vector<4x32xf32> to vector<32xf32>
      %180 = vector.shape_cast %179 : vector<32xf32> to vector<1x32xf32>
      %cst_126 = arith.constant 4.000000e+00 : f32
      %181 = vector.broadcast %cst_126 : f32 to vector<1x32xf32>
      %182 = arith.divf %180, %181 : vector<1x32xf32>
      %cst_127 = arith.constant 9.99999974E-6 : f32
      %183 = vector.broadcast %cst_127 : f32 to vector<1x32xf32>
      %184 = arith.addf %182, %183 : vector<1x32xf32>
      %185 = math.rsqrt %184 : vector<1x32xf32>
      %186 = arith.mulf %185, %36 : vector<1x32xf32>
      %187 = vector.broadcast %186 : vector<1x32xf32> to vector<4x32xf32>
      %188 = arith.mulf %177, %187 : vector<4x32xf32>
      %189 = vector.broadcast %37 : vector<1x32xf32> to vector<4x32xf32>
      %190 = arith.addf %188, %189 : vector<4x32xf32>
      %191 = arith.addf %190, %126 : vector<4x32xf32>
      %192 = arith.truncf %191 : vector<4x32xf32> to vector<4x32xbf16>
      %cst_128 = arith.constant dense<0.000000e+00> : vector<4x32xf32>
      %193 = tpu.matmul %192, %16, %cst_128 {dimension_numbers = #tpu.dot_dimension_numbers<[1], [0], [0], [1], [0, 0, 1, 1], [], []>} : vector<4x32xbf16>, vector<32x32xbf16>, vector<4x32xf32> -> vector<4x32xf32>
      %194 = arith.truncf %arg26 : vector<4x32xf32> to vector<4x32xbf16>
      %cst_129 = arith.constant dense<0.000000e+00> : vector<4x32xf32>
      %195 = tpu.matmul %194, %18, %cst_129 {dimension_numbers = #tpu.dot_dimension_numbers<[1], [0], [0], [1], [0, 0, 1, 1], [], []>} : vector<4x32xbf16>, vector<32x32xbf16>, vector<4x32xf32> -> vector<4x32xf32>
      %196 = arith.addf %193, %195 : vector<4x32xf32>
      %197 = vector.broadcast %30 : vector<1x32xf32> to vector<4x32xf32>
      %198 = arith.addf %196, %197 : vector<4x32xf32>
      %199 = arith.negf %198 : vector<4x32xf32>
      %200 = math.exp %199 : vector<4x32xf32>
      %cst_130 = arith.constant 1.000000e+00 : f32
      %201 = vector.broadcast %cst_130 : f32 to vector<4x32xf32>
      %202 = arith.addf %201, %200 : vector<4x32xf32>
      %203 = arith.divf %201, %202 : vector<4x32xf32>
      %cst_131 = arith.constant dense<0.000000e+00> : vector<4x32xf32>
      %204 = tpu.matmul %192, %20, %cst_131 {dimension_numbers = #tpu.dot_dimension_numbers<[1], [0], [0], [1], [0, 0, 1, 1], [], []>} : vector<4x32xbf16>, vector<32x32xbf16>, vector<4x32xf32> -> vector<4x32xf32>
      %205 = arith.truncf %arg28 : vector<4x32xf32> to vector<4x32xbf16>
      %cst_132 = arith.constant dense<0.000000e+00> : vector<4x32xf32>
      %206 = tpu.matmul %205, %22, %cst_132 {dimension_numbers = #tpu.dot_dimension_numbers<[1], [0], [0], [1], [0, 0, 1, 1], [], []>} : vector<4x32xbf16>, vector<32x32xbf16>, vector<4x32xf32> -> vector<4x32xf32>
      %207 = arith.addf %204, %206 : vector<4x32xf32>
      %208 = vector.broadcast %31 : vector<1x32xf32> to vector<4x32xf32>
      %209 = arith.addf %207, %208 : vector<4x32xf32>
      %210 = arith.negf %209 : vector<4x32xf32>
      %211 = math.exp %210 : vector<4x32xf32>
      %cst_133 = arith.constant 1.000000e+00 : f32
      %212 = vector.broadcast %cst_133 : f32 to vector<4x32xf32>
      %213 = arith.addf %212, %211 : vector<4x32xf32>
      %214 = arith.divf %212, %213 : vector<4x32xf32>
      %215 = arith.mulf %214, %arg28 : vector<4x32xf32>
      %cst_134 = arith.constant 1.000000e+00 : f32
      %216 = vector.broadcast %cst_134 : f32 to vector<4x32xf32>
      %217 = arith.subf %216, %214 : vector<4x32xf32>
      %218 = arith.mulf %217, %arg27 : vector<4x32xf32>
      %219 = arith.addf %215, %218 : vector<4x32xf32>
      %220 = arith.subf %191, %arg26 : vector<4x32xf32>
      %221 = arith.mulf %220, %203 : vector<4x32xf32>
      %222 = arith.addf %arg26, %221 : vector<4x32xf32>
      %cst_135 = arith.constant 1.800000e+00 : f32
      %223 = vector.broadcast %cst_135 : f32 to vector<4x32xf32>
      %224 = arith.mulf %223, %219 : vector<4x32xf32>
      %cst_136 = arith.constant 1.000000e-01 : f32
      %225 = vector.broadcast %cst_136 : f32 to vector<4x32xf32>
      %226 = arith.addf %225, %224 : vector<4x32xf32>
      %227 = arith.subf %222, %226 : vector<4x32xf32>
      %cst_137 = arith.constant 0.000000e+00 : f32
      %228 = vector.broadcast %cst_137 : f32 to vector<4x32xf32>
      %229 = arith.cmpf ogt, %227, %228 : vector<4x32xf32>
      %230 = arith.extui %229 : vector<4x32xi1> to vector<4x32xi32>
      %231 = arith.sitofp %230 : vector<4x32xi32> to vector<4x32xf32>
      %cst_138 = arith.constant 1.000000e+00 : f32
      %232 = vector.broadcast %cst_138 : f32 to vector<4x32xf32>
      %233 = arith.subf %232, %231 : vector<4x32xf32>
      %234 = arith.mulf %233, %222 : vector<4x32xf32>
      %235 = arith.truncf %231 : vector<4x32xf32> to vector<4x32xbf16>
      %cst_139 = arith.constant dense<0.000000e+00> : vector<4x8xf32>
      %236 = tpu.matmul %235, %23, %cst_139 {dimension_numbers = #tpu.dot_dimension_numbers<[1], [0], [0], [1], [0, 0, 1, 1], [], []>} : vector<4x32xbf16>, vector<32x8xbf16>, vector<4x8xf32> -> vector<4x8xf32>
      %cst_140 = arith.constant dense<0.000000e+00> : vector<8xf32>
      %237 = vector.multi_reduction <add>, %236, %cst_140 [0] : vector<4x8xf32> to vector<8xf32>
      %238 = vector.shape_cast %237 : vector<8xf32> to vector<1x8xf32>
      %cst_141 = arith.constant 4.000000e+00 : f32
      %239 = vector.broadcast %cst_141 : f32 to vector<1x8xf32>
      %240 = arith.divf %238, %239 : vector<1x8xf32>
      %241 = vector.broadcast %240 : vector<1x8xf32> to vector<4x8xf32>
      %242 = arith.subf %236, %241 : vector<4x8xf32>
      %243 = arith.mulf %242, %242 : vector<4x8xf32>
      %cst_142 = arith.constant dense<0.000000e+00> : vector<8xf32>
      %244 = vector.multi_reduction <add>, %243, %cst_142 [0] : vector<4x8xf32> to vector<8xf32>
      %245 = vector.shape_cast %244 : vector<8xf32> to vector<1x8xf32>
      %cst_143 = arith.constant 4.000000e+00 : f32
      %246 = vector.broadcast %cst_143 : f32 to vector<1x8xf32>
      %247 = arith.divf %245, %246 : vector<1x8xf32>
      %cst_144 = arith.constant 9.99999974E-6 : f32
      %248 = vector.broadcast %cst_144 : f32 to vector<1x8xf32>
      %249 = arith.addf %247, %248 : vector<1x8xf32>
      %250 = math.rsqrt %249 : vector<1x8xf32>
      %251 = arith.mulf %250, %41 : vector<1x8xf32>
      %252 = vector.broadcast %251 : vector<1x8xf32> to vector<4x8xf32>
      %253 = arith.mulf %242, %252 : vector<4x8xf32>
      %254 = vector.broadcast %42 : vector<1x8xf32> to vector<4x8xf32>
      %255 = arith.addf %253, %254 : vector<4x8xf32>
      %256 = arith.truncf %255 : vector<4x8xf32> to vector<4x8xbf16>
      %cst_145 = arith.constant dense<0.000000e+00> : vector<4x8xf32>
      %257 = tpu.matmul %256, %25, %cst_145 {dimension_numbers = #tpu.dot_dimension_numbers<[1], [0], [0], [1], [0, 0, 1, 1], [], []>} : vector<4x8xbf16>, vector<8x8xbf16>, vector<4x8xf32> -> vector<4x8xf32>
      %258 = arith.truncf %arg29 : vector<4x8xf32> to vector<4x8xbf16>
      %cst_146 = arith.constant dense<0.000000e+00> : vector<4x8xf32>
      %259 = tpu.matmul %258, %27, %cst_146 {dimension_numbers = #tpu.dot_dimension_numbers<[1], [0], [0], [1], [0, 0, 1, 1], [], []>} : vector<4x8xbf16>, vector<8x8xbf16>, vector<4x8xf32> -> vector<4x8xf32>
      %260 = arith.addf %257, %259 : vector<4x8xf32>
      %261 = vector.broadcast %40 : vector<1x8xf32> to vector<4x8xf32>
      %262 = arith.addf %260, %261 : vector<4x8xf32>
      %263 = arith.negf %262 : vector<4x8xf32>
      %264 = math.exp %263 : vector<4x8xf32>
      %cst_147 = arith.constant 1.000000e+00 : f32
      %265 = vector.broadcast %cst_147 : f32 to vector<4x8xf32>
      %266 = arith.addf %265, %264 : vector<4x8xf32>
      %267 = arith.divf %265, %266 : vector<4x8xf32>
      %cst_148 = arith.constant 1.000000e+00 : f32
      %268 = vector.broadcast %cst_148 : f32 to vector<4x8xf32>
      %269 = arith.subf %268, %267 : vector<4x8xf32>
      %270 = arith.mulf %269, %arg29 : vector<4x8xf32>
      %271 = arith.mulf %255, %267 : vector<4x8xf32>
      %272 = arith.addf %270, %271 : vector<4x8xf32>
      %273 = arith.index_cast %61 : i32 to index
      %c0_149 = arith.constant 0 : index
      %c0_150 = arith.constant 0 : index
      %274 = vector.load %arg14[%273, %c0_149, %c0_150] : memref<100x4x8xf32, #tpu.memory_space<vmem>>, vector<1x4x8xf32>
      %275 = vector.shape_cast %274 : vector<1x4x8xf32> to vector<4x8xf32>
      %276 = vector.shape_cast %272 : vector<4x8xf32> to vector<1x4x8xf32>
      tpu.vector_store %arg14[%273, %c0_149, %c0_150], %276 {strides = array<i32>} : memref<100x4x8xf32, #tpu.memory_space<vmem>>, vector<1x4x8xf32>,
      %277 = arith.index_cast %60 : i32 to index
      %c0_151 = arith.constant 0 : index
      %c0_152 = arith.constant 0 : index
      %278 = vector.load %arg0[%277, %c0_151, %c0_152] : memref<100x4x16xbf16, #tpu.memory_space<vmem>>, vector<1x4x16xbf16>
      %279 = vector.shape_cast %278 : vector<1x4x16xbf16> to vector<4x16xbf16>
      %280 = arith.truncf %166 : vector<4x32xf32> to vector<4x32xbf16>
      %cst_153 = arith.constant dense<0.000000e+00> : vector<4x32xf32>
      %281 = tpu.matmul %279, %0, %cst_153 {dimension_numbers = #tpu.dot_dimension_numbers<[1], [0], [0], [1], [0, 0, 1, 1], [], []>} : vector<4x16xbf16>, vector<16x32xbf16>, vector<4x32xf32> -> vector<4x32xf32>
      %cst_154 = arith.constant dense<0.000000e+00> : vector<32xf32>
      %282 = vector.multi_reduction <add>, %281, %cst_154 [0] : vector<4x32xf32> to vector<32xf32>
      %283 = vector.shape_cast %282 : vector<32xf32> to vector<1x32xf32>
      %cst_155 = arith.constant 4.000000e+00 : f32
      %284 = vector.broadcast %cst_155 : f32 to vector<1x32xf32>
      %285 = arith.divf %283, %284 : vector<1x32xf32>
      %286 = vector.broadcast %285 : vector<1x32xf32> to vector<4x32xf32>
      %287 = arith.subf %281, %286 : vector<4x32xf32>
      %288 = arith.mulf %287, %287 : vector<4x32xf32>
      %cst_156 = arith.constant dense<0.000000e+00> : vector<32xf32>
      %289 = vector.multi_reduction <add>, %288, %cst_156 [0] : vector<4x32xf32> to vector<32xf32>
      %290 = vector.shape_cast %289 : vector<32xf32> to vector<1x32xf32>
      %cst_157 = arith.constant 4.000000e+00 : f32
      %291 = vector.broadcast %cst_157 : f32 to vector<1x32xf32>
      %292 = arith.divf %290, %291 : vector<1x32xf32>
      %cst_158 = arith.constant 9.99999974E-6 : f32
      %293 = vector.broadcast %cst_158 : f32 to vector<1x32xf32>
      %294 = arith.addf %292, %293 : vector<1x32xf32>
      %295 = math.rsqrt %294 : vector<1x32xf32>
      %296 = arith.mulf %295, %32 : vector<1x32xf32>
      %297 = vector.broadcast %296 : vector<1x32xf32> to vector<4x32xf32>
      %298 = arith.mulf %287, %297 : vector<4x32xf32>
      %299 = vector.broadcast %33 : vector<1x32xf32> to vector<4x32xf32>
      %300 = arith.addf %298, %299 : vector<4x32xf32>
      %cst_159 = arith.constant dense<0.000000e+00> : vector<4x32xf32>
      %301 = tpu.matmul %280, %2, %cst_159 {dimension_numbers = #tpu.dot_dimension_numbers<[1], [0], [0], [1], [0, 0, 1, 1], [], []>} : vector<4x32xbf16>, vector<32x32xbf16>, vector<4x32xf32> -> vector<4x32xf32>
      %cst_160 = arith.constant dense<0.000000e+00> : vector<32xf32>
      %302 = vector.multi_reduction <add>, %301, %cst_160 [0] : vector<4x32xf32> to vector<32xf32>
      %303 = vector.shape_cast %302 : vector<32xf32> to vector<1x32xf32>
      %cst_161 = arith.constant 4.000000e+00 : f32
      %304 = vector.broadcast %cst_161 : f32 to vector<1x32xf32>
      %305 = arith.divf %303, %304 : vector<1x32xf32>
      %306 = vector.broadcast %305 : vector<1x32xf32> to vector<4x32xf32>
      %307 = arith.subf %301, %306 : vector<4x32xf32>
      %308 = arith.mulf %307, %307 : vector<4x32xf32>
      %cst_162 = arith.constant dense<0.000000e+00> : vector<32xf32>
      %309 = vector.multi_reduction <add>, %308, %cst_162 [0] : vector<4x32xf32> to vector<32xf32>
      %310 = vector.shape_cast %309 : vector<32xf32> to vector<1x32xf32>
      %cst_163 = arith.constant 4.000000e+00 : f32
      %311 = vector.broadcast %cst_163 : f32 to vector<1x32xf32>
      %312 = arith.divf %310, %311 : vector<1x32xf32>
      %cst_164 = arith.constant 9.99999974E-6 : f32
      %313 = vector.broadcast %cst_164 : f32 to vector<1x32xf32>
      %314 = arith.addf %312, %313 : vector<1x32xf32>
      %315 = math.rsqrt %314 : vector<1x32xf32>
      %316 = arith.mulf %315, %34 : vector<1x32xf32>
      %317 = vector.broadcast %316 : vector<1x32xf32> to vector<4x32xf32>
      %318 = arith.mulf %307, %317 : vector<4x32xf32>
      %319 = vector.broadcast %35 : vector<1x32xf32> to vector<4x32xf32>
      %320 = arith.addf %318, %319 : vector<4x32xf32>
      %321 = arith.addf %300, %320 : vector<4x32xf32>
      %cst_165 = arith.constant dense<0.000000e+00> : vector<4x32xf32>
      %322 = tpu.matmul %280, %4, %cst_165 {dimension_numbers = #tpu.dot_dimension_numbers<[1], [0], [0], [1], [0, 0, 1, 1], [], []>} : vector<4x32xbf16>, vector<32x32xbf16>, vector<4x32xf32> -> vector<4x32xf32>
      %cst_166 = arith.constant dense<0.000000e+00> : vector<32xf32>
      %323 = vector.multi_reduction <add>, %322, %cst_166 [0] : vector<4x32xf32> to vector<32xf32>
      %324 = vector.shape_cast %323 : vector<32xf32> to vector<1x32xf32>
      %cst_167 = arith.constant 4.000000e+00 : f32
      %325 = vector.broadcast %cst_167 : f32 to vector<1x32xf32>
      %326 = arith.divf %324, %325 : vector<1x32xf32>
      %327 = vector.broadcast %326 : vector<1x32xf32> to vector<4x32xf32>
      %328 = arith.subf %322, %327 : vector<4x32xf32>
      %329 = arith.mulf %328, %328 : vector<4x32xf32>
      %cst_168 = arith.constant dense<0.000000e+00> : vector<32xf32>
      %330 = vector.multi_reduction <add>, %329, %cst_168 [0] : vector<4x32xf32> to vector<32xf32>
      %331 = vector.shape_cast %330 : vector<32xf32> to vector<1x32xf32>
      %cst_169 = arith.constant 4.000000e+00 : f32
      %332 = vector.broadcast %cst_169 : f32 to vector<1x32xf32>
      %333 = arith.divf %331, %332 : vector<1x32xf32>
      %cst_170 = arith.constant 9.99999974E-6 : f32
      %334 = vector.broadcast %cst_170 : f32 to vector<1x32xf32>
      %335 = arith.addf %333, %334 : vector<1x32xf32>
      %336 = math.rsqrt %335 : vector<1x32xf32>
      %337 = arith.mulf %336, %38 : vector<1x32xf32>
      %338 = vector.broadcast %337 : vector<1x32xf32> to vector<4x32xf32>
      %339 = arith.mulf %328, %338 : vector<4x32xf32>
      %340 = vector.broadcast %39 : vector<1x32xf32> to vector<4x32xf32>
      %341 = arith.addf %339, %340 : vector<4x32xf32>
      %342 = arith.truncf %321 : vector<4x32xf32> to vector<4x32xbf16>
      %cst_171 = arith.constant dense<0.000000e+00> : vector<4x32xf32>
      %343 = tpu.matmul %342, %6, %cst_171 {dimension_numbers = #tpu.dot_dimension_numbers<[1], [0], [0], [1], [0, 0, 1, 1], [], []>} : vector<4x32xbf16>, vector<32x32xbf16>, vector<4x32xf32> -> vector<4x32xf32>
      %344 = arith.truncf %169 : vector<4x32xf32> to vector<4x32xbf16>
      %cst_172 = arith.constant dense<0.000000e+00> : vector<4x32xf32>
      %345 = tpu.matmul %344, %8, %cst_172 {dimension_numbers = #tpu.dot_dimension_numbers<[1], [0], [0], [1], [0, 0, 1, 1], [], []>} : vector<4x32xbf16>, vector<32x32xbf16>, vector<4x32xf32> -> vector<4x32xf32>
      %346 = arith.addf %343, %345 : vector<4x32xf32>
      %347 = vector.broadcast %28 : vector<1x32xf32> to vector<4x32xf32>
      %348 = arith.addf %346, %347 : vector<4x32xf32>
      %349 = arith.negf %348 : vector<4x32xf32>
      %350 = math.exp %349 : vector<4x32xf32>
      %cst_173 = arith.constant 1.000000e+00 : f32
      %351 = vector.broadcast %cst_173 : f32 to vector<4x32xf32>
      %352 = arith.addf %351, %350 : vector<4x32xf32>
      %353 = arith.divf %351, %352 : vector<4x32xf32>
      %cst_174 = arith.constant dense<0.000000e+00> : vector<4x32xf32>
      %354 = tpu.matmul %342, %10, %cst_174 {dimension_numbers = #tpu.dot_dimension_numbers<[1], [0], [0], [1], [0, 0, 1, 1], [], []>} : vector<4x32xbf16>, vector<32x32xbf16>, vector<4x32xf32> -> vector<4x32xf32>
      %355 = arith.truncf %154 : vector<4x32xf32> to vector<4x32xbf16>
      %cst_175 = arith.constant dense<0.000000e+00> : vector<4x32xf32>
      %356 = tpu.matmul %355, %12, %cst_175 {dimension_numbers = #tpu.dot_dimension_numbers<[1], [0], [0], [1], [0, 0, 1, 1], [], []>} : vector<4x32xbf16>, vector<32x32xbf16>, vector<4x32xf32> -> vector<4x32xf32>
      %357 = arith.addf %354, %356 : vector<4x32xf32>
      %358 = vector.broadcast %29 : vector<1x32xf32> to vector<4x32xf32>
      %359 = arith.addf %357, %358 : vector<4x32xf32>
      %360 = arith.negf %359 : vector<4x32xf32>
      %361 = math.exp %360 : vector<4x32xf32>
      %cst_176 = arith.constant 1.000000e+00 : f32
      %362 = vector.broadcast %cst_176 : f32 to vector<4x32xf32>
      %363 = arith.addf %362, %361 : vector<4x32xf32>
      %364 = arith.divf %362, %363 : vector<4x32xf32>
      %365 = arith.mulf %364, %154 : vector<4x32xf32>
      %cst_177 = arith.constant 1.000000e+00 : f32
      %366 = vector.broadcast %cst_177 : f32 to vector<4x32xf32>
      %367 = arith.subf %366, %364 : vector<4x32xf32>
      %368 = arith.mulf %367, %166 : vector<4x32xf32>
      %369 = arith.addf %365, %368 : vector<4x32xf32>
      %370 = arith.subf %321, %169 : vector<4x32xf32>
      %371 = arith.mulf %370, %353 : vector<4x32xf32>
      %372 = arith.addf %169, %371 : vector<4x32xf32>
      %cst_178 = arith.constant 1.800000e+00 : f32
      %373 = vector.broadcast %cst_178 : f32 to vector<4x32xf32>
      %374 = arith.mulf %373, %369 : vector<4x32xf32>
      %cst_179 = arith.constant 1.000000e-01 : f32
      %375 = vector.broadcast %cst_179 : f32 to vector<4x32xf32>
      %376 = arith.addf %375, %374 : vector<4x32xf32>
      %377 = arith.subf %372, %376 : vector<4x32xf32>
      %cst_180 = arith.constant 0.000000e+00 : f32
      %378 = vector.broadcast %cst_180 : f32 to vector<4x32xf32>
      %379 = arith.cmpf ogt, %377, %378 : vector<4x32xf32>
      %380 = arith.extui %379 : vector<4x32xi1> to vector<4x32xi32>
      %381 = arith.sitofp %380 : vector<4x32xi32> to vector<4x32xf32>
      %cst_181 = arith.constant 1.000000e+00 : f32
      %382 = vector.broadcast %cst_181 : f32 to vector<4x32xf32>
      %383 = arith.subf %382, %381 : vector<4x32xf32>
      %384 = arith.mulf %383, %372 : vector<4x32xf32>
      %385 = arith.truncf %381 : vector<4x32xf32> to vector<4x32xbf16>
      %cst_182 = arith.constant dense<0.000000e+00> : vector<4x32xf32>
      %386 = tpu.matmul %385, %14, %cst_182 {dimension_numbers = #tpu.dot_dimension_numbers<[1], [0], [0], [1], [0, 0, 1, 1], [], []>} : vector<4x32xbf16>, vector<32x32xbf16>, vector<4x32xf32> -> vector<4x32xf32>
      %cst_183 = arith.constant dense<0.000000e+00> : vector<32xf32>
      %387 = vector.multi_reduction <add>, %386, %cst_183 [0] : vector<4x32xf32> to vector<32xf32>
      %388 = vector.shape_cast %387 : vector<32xf32> to vector<1x32xf32>
      %cst_184 = arith.constant 4.000000e+00 : f32
      %389 = vector.broadcast %cst_184 : f32 to vector<1x32xf32>
      %390 = arith.divf %388, %389 : vector<1x32xf32>
      %391 = vector.broadcast %390 : vector<1x32xf32> to vector<4x32xf32>
      %392 = arith.subf %386, %391 : vector<4x32xf32>
      %393 = arith.mulf %392, %392 : vector<4x32xf32>
      %cst_185 = arith.constant dense<0.000000e+00> : vector<32xf32>
      %394 = vector.multi_reduction <add>, %393, %cst_185 [0] : vector<4x32xf32> to vector<32xf32>
      %395 = vector.shape_cast %394 : vector<32xf32> to vector<1x32xf32>
      %cst_186 = arith.constant 4.000000e+00 : f32
      %396 = vector.broadcast %cst_186 : f32 to vector<1x32xf32>
      %397 = arith.divf %395, %396 : vector<1x32xf32>
      %cst_187 = arith.constant 9.99999974E-6 : f32
      %398 = vector.broadcast %cst_187 : f32 to vector<1x32xf32>
      %399 = arith.addf %397, %398 : vector<1x32xf32>
      %400 = math.rsqrt %399 : vector<1x32xf32>
      %401 = arith.mulf %400, %36 : vector<1x32xf32>
      %402 = vector.broadcast %401 : vector<1x32xf32> to vector<4x32xf32>
      %403 = arith.mulf %392, %402 : vector<4x32xf32>
      %404 = vector.broadcast %37 : vector<1x32xf32> to vector<4x32xf32>
      %405 = arith.addf %403, %404 : vector<4x32xf32>
      %406 = arith.addf %405, %341 : vector<4x32xf32>
      %407 = arith.truncf %406 : vector<4x32xf32> to vector<4x32xbf16>
      %cst_188 = arith.constant dense<0.000000e+00> : vector<4x32xf32>
      %408 = tpu.matmul %407, %16, %cst_188 {dimension_numbers = #tpu.dot_dimension_numbers<[1], [0], [0], [1], [0, 0, 1, 1], [], []>} : vector<4x32xbf16>, vector<32x32xbf16>, vector<4x32xf32> -> vector<4x32xf32>
      %409 = arith.truncf %234 : vector<4x32xf32> to vector<4x32xbf16>
      %cst_189 = arith.constant dense<0.000000e+00> : vector<4x32xf32>
      %410 = tpu.matmul %409, %18, %cst_189 {dimension_numbers = #tpu.dot_dimension_numbers<[1], [0], [0], [1], [0, 0, 1, 1], [], []>} : vector<4x32xbf16>, vector<32x32xbf16>, vector<4x32xf32> -> vector<4x32xf32>
      %411 = arith.addf %408, %410 : vector<4x32xf32>
      %412 = vector.broadcast %30 : vector<1x32xf32> to vector<4x32xf32>
      %413 = arith.addf %411, %412 : vector<4x32xf32>
      %414 = arith.negf %413 : vector<4x32xf32>
      %415 = math.exp %414 : vector<4x32xf32>
      %cst_190 = arith.constant 1.000000e+00 : f32
      %416 = vector.broadcast %cst_190 : f32 to vector<4x32xf32>
      %417 = arith.addf %416, %415 : vector<4x32xf32>
      %418 = arith.divf %416, %417 : vector<4x32xf32>
      %cst_191 = arith.constant dense<0.000000e+00> : vector<4x32xf32>
      %419 = tpu.matmul %407, %20, %cst_191 {dimension_numbers = #tpu.dot_dimension_numbers<[1], [0], [0], [1], [0, 0, 1, 1], [], []>} : vector<4x32xbf16>, vector<32x32xbf16>, vector<4x32xf32> -> vector<4x32xf32>
      %420 = arith.truncf %219 : vector<4x32xf32> to vector<4x32xbf16>
      %cst_192 = arith.constant dense<0.000000e+00> : vector<4x32xf32>
      %421 = tpu.matmul %420, %22, %cst_192 {dimension_numbers = #tpu.dot_dimension_numbers<[1], [0], [0], [1], [0, 0, 1, 1], [], []>} : vector<4x32xbf16>, vector<32x32xbf16>, vector<4x32xf32> -> vector<4x32xf32>
      %422 = arith.addf %419, %421 : vector<4x32xf32>
      %423 = vector.broadcast %31 : vector<1x32xf32> to vector<4x32xf32>
      %424 = arith.addf %422, %423 : vector<4x32xf32>
      %425 = arith.negf %424 : vector<4x32xf32>
      %426 = math.exp %425 : vector<4x32xf32>
      %cst_193 = arith.constant 1.000000e+00 : f32
      %427 = vector.broadcast %cst_193 : f32 to vector<4x32xf32>
      %428 = arith.addf %427, %426 : vector<4x32xf32>
      %429 = arith.divf %427, %428 : vector<4x32xf32>
      %430 = arith.mulf %429, %219 : vector<4x32xf32>
      %cst_194 = arith.constant 1.000000e+00 : f32
      %431 = vector.broadcast %cst_194 : f32 to vector<4x32xf32>
      %432 = arith.subf %431, %429 : vector<4x32xf32>
      %433 = arith.mulf %432, %231 : vector<4x32xf32>
      %434 = arith.addf %430, %433 : vector<4x32xf32>
      %435 = arith.subf %406, %234 : vector<4x32xf32>
      %436 = arith.mulf %435, %418 : vector<4x32xf32>
      %437 = arith.addf %234, %436 : vector<4x32xf32>
      %cst_195 = arith.constant 1.800000e+00 : f32
      %438 = vector.broadcast %cst_195 : f32 to vector<4x32xf32>
      %439 = arith.mulf %438, %434 : vector<4x32xf32>
      %cst_196 = arith.constant 1.000000e-01 : f32
      %440 = vector.broadcast %cst_196 : f32 to vector<4x32xf32>
      %441 = arith.addf %440, %439 : vector<4x32xf32>
      %442 = arith.subf %437, %441 : vector<4x32xf32>
      %cst_197 = arith.constant 0.000000e+00 : f32
      %443 = vector.broadcast %cst_197 : f32 to vector<4x32xf32>
      %444 = arith.cmpf ogt, %442, %443 : vector<4x32xf32>
      %445 = arith.extui %444 : vector<4x32xi1> to vector<4x32xi32>
      %446 = arith.sitofp %445 : vector<4x32xi32> to vector<4x32xf32>
      %cst_198 = arith.constant 1.000000e+00 : f32
      %447 = vector.broadcast %cst_198 : f32 to vector<4x32xf32>
      %448 = arith.subf %447, %446 : vector<4x32xf32>
      %449 = arith.mulf %448, %437 : vector<4x32xf32>
      %450 = arith.truncf %446 : vector<4x32xf32> to vector<4x32xbf16>
      %cst_199 = arith.constant dense<0.000000e+00> : vector<4x8xf32>
      %451 = tpu.matmul %450, %23, %cst_199 {dimension_numbers = #tpu.dot_dimension_numbers<[1], [0], [0], [1], [0, 0, 1, 1], [], []>} : vector<4x32xbf16>, vector<32x8xbf16>, vector<4x8xf32> -> vector<4x8xf32>
      %cst_200 = arith.constant dense<0.000000e+00> : vector<8xf32>
      %452 = vector.multi_reduction <add>, %451, %cst_200 [0] : vector<4x8xf32> to vector<8xf32>
      %453 = vector.shape_cast %452 : vector<8xf32> to vector<1x8xf32>
      %cst_201 = arith.constant 4.000000e+00 : f32
      %454 = vector.broadcast %cst_201 : f32 to vector<1x8xf32>
      %455 = arith.divf %453, %454 : vector<1x8xf32>
      %456 = vector.broadcast %455 : vector<1x8xf32> to vector<4x8xf32>
      %457 = arith.subf %451, %456 : vector<4x8xf32>
      %458 = arith.mulf %457, %457 : vector<4x8xf32>
      %cst_202 = arith.constant dense<0.000000e+00> : vector<8xf32>
      %459 = vector.multi_reduction <add>, %458, %cst_202 [0] : vector<4x8xf32> to vector<8xf32>
      %460 = vector.shape_cast %459 : vector<8xf32> to vector<1x8xf32>
      %cst_203 = arith.constant 4.000000e+00 : f32
      %461 = vector.broadcast %cst_203 : f32 to vector<1x8xf32>
      %462 = arith.divf %460, %461 : vector<1x8xf32>
      %cst_204 = arith.constant 9.99999974E-6 : f32
      %463 = vector.broadcast %cst_204 : f32 to vector<1x8xf32>
      %464 = arith.addf %462, %463 : vector<1x8xf32>
      %465 = math.rsqrt %464 : vector<1x8xf32>
      %466 = arith.mulf %465, %41 : vector<1x8xf32>
      %467 = vector.broadcast %466 : vector<1x8xf32> to vector<4x8xf32>
      %468 = arith.mulf %457, %467 : vector<4x8xf32>
      %469 = vector.broadcast %42 : vector<1x8xf32> to vector<4x8xf32>
      %470 = arith.addf %468, %469 : vector<4x8xf32>
      %471 = arith.truncf %470 : vector<4x8xf32> to vector<4x8xbf16>
      %cst_205 = arith.constant dense<0.000000e+00> : vector<4x8xf32>
      %472 = tpu.matmul %471, %25, %cst_205 {dimension_numbers = #tpu.dot_dimension_numbers<[1], [0], [0], [1], [0, 0, 1, 1], [], []>} : vector<4x8xbf16>, vector<8x8xbf16>, vector<4x8xf32> -> vector<4x8xf32>
      %473 = arith.truncf %272 : vector<4x8xf32> to vector<4x8xbf16>
      %cst_206 = arith.constant dense<0.000000e+00> : vector<4x8xf32>
      %474 = tpu.matmul %473, %27, %cst_206 {dimension_numbers = #tpu.dot_dimension_numbers<[1], [0], [0], [1], [0, 0, 1, 1], [], []>} : vector<4x8xbf16>, vector<8x8xbf16>, vector<4x8xf32> -> vector<4x8xf32>
      %475 = arith.addf %472, %474 : vector<4x8xf32>
      %476 = vector.broadcast %40 : vector<1x8xf32> to vector<4x8xf32>
      %477 = arith.addf %475, %476 : vector<4x8xf32>
      %478 = arith.negf %477 : vector<4x8xf32>
      %479 = math.exp %478 : vector<4x8xf32>
      %cst_207 = arith.constant 1.000000e+00 : f32
      %480 = vector.broadcast %cst_207 : f32 to vector<4x8xf32>
      %481 = arith.addf %480, %479 : vector<4x8xf32>
      %482 = arith.divf %480, %481 : vector<4x8xf32>
      %cst_208 = arith.constant 1.000000e+00 : f32
      %483 = vector.broadcast %cst_208 : f32 to vector<4x8xf32>
      %484 = arith.subf %483, %482 : vector<4x8xf32>
      %485 = arith.mulf %484, %272 : vector<4x8xf32>
      %486 = arith.mulf %470, %482 : vector<4x8xf32>
      %487 = arith.addf %485, %486 : vector<4x8xf32>
      %488 = arith.index_cast %60 : i32 to index
      %c0_209 = arith.constant 0 : index
      %c0_210 = arith.constant 0 : index
      %489 = vector.load %arg14[%488, %c0_209, %c0_210] : memref<100x4x8xf32, #tpu.memory_space<vmem>>, vector<1x4x8xf32>
      %490 = vector.shape_cast %489 : vector<1x4x8xf32> to vector<4x8xf32>
      %491 = vector.shape_cast %487 : vector<4x8xf32> to vector<1x4x8xf32>
      tpu.vector_store %arg14[%488, %c0_209, %c0_210], %491 {strides = array<i32>} : memref<100x4x8xf32, #tpu.memory_space<vmem>>, vector<1x4x8xf32>,
      scf.yield %384, %381, %369, %449, %446, %434, %487 : vector<4x32xf32>, vector<4x32xf32>, vector<4x32xf32>, vector<4x32xf32>, vector<4x32xf32>, vector<4x32xf32>, vector<4x8xf32>
    }
    %c50_i32_75 = arith.constant 50 : i32
    %c0_76 = arith.constant 0 : index
    %c0_77 = arith.constant 0 : index
    %52 = vector.load %arg15[%c0_76, %c0_77] : memref<4x32xf32, #tpu.memory_space<vmem>>, vector<4x32xf32>
    tpu.vector_store %arg15[%c0_76, %c0_77], %51#0 {strides = array<i32>} : memref<4x32xf32, #tpu.memory_space<vmem>>, vector<4x32xf32>,
    %c0_78 = arith.constant 0 : index
    %c0_79 = arith.constant 0 : index
    %53 = vector.load %arg16[%c0_78, %c0_79] : memref<4x32xf32, #tpu.memory_space<vmem>>, vector<4x32xf32>
    tpu.vector_store %arg16[%c0_78, %c0_79], %51#1 {strides = array<i32>} : memref<4x32xf32, #tpu.memory_space<vmem>>, vector<4x32xf32>,
    %c0_80 = arith.constant 0 : index
    %c0_81 = arith.constant 0 : index
    %54 = vector.load %arg17[%c0_80, %c0_81] : memref<4x32xf32, #tpu.memory_space<vmem>>, vector<4x32xf32>
    tpu.vector_store %arg17[%c0_80, %c0_81], %51#2 {strides = array<i32>} : memref<4x32xf32, #tpu.memory_space<vmem>>, vector<4x32xf32>,
    %c0_82 = arith.constant 0 : index
    %c0_83 = arith.constant 0 : index
    %55 = vector.load %arg18[%c0_82, %c0_83] : memref<4x32xf32, #tpu.memory_space<vmem>>, vector<4x32xf32>
    tpu.vector_store %arg18[%c0_82, %c0_83], %51#3 {strides = array<i32>} : memref<4x32xf32, #tpu.memory_space<vmem>>, vector<4x32xf32>,
    %c0_84 = arith.constant 0 : index
    %c0_85 = arith.constant 0 : index
    %56 = vector.load %arg19[%c0_84, %c0_85] : memref<4x32xf32, #tpu.memory_space<vmem>>, vector<4x32xf32>
    tpu.vector_store %arg19[%c0_84, %c0_85], %51#4 {strides = array<i32>} : memref<4x32xf32, #tpu.memory_space<vmem>>, vector<4x32xf32>,
    %c0_86 = arith.constant 0 : index
    %c0_87 = arith.constant 0 : index
    %57 = vector.load %arg20[%c0_86, %c0_87] : memref<4x32xf32, #tpu.memory_space<vmem>>, vector<4x32xf32>
    tpu.vector_store %arg20[%c0_86, %c0_87], %51#5 {strides = array<i32>} : memref<4x32xf32, #tpu.memory_space<vmem>>, vector<4x32xf32>,
    %c0_88 = arith.constant 0 : index
    %c0_89 = arith.constant 0 : index
    %58 = vector.load %arg21[%c0_88, %c0_89] : memref<4x8xf32, #tpu.memory_space<vmem>>, vector<4x8xf32>
    tpu.vector_store %arg21[%c0_88, %c0_89], %51#6 {strides = array<i32>} : memref<4x8xf32, #tpu.memory_space<vmem>>, vector<4x8xf32>,
    return
  }
}

</mosaic_0001>

<bundles_post_ra>
// kernel: tpu_custom_call.1
= control target key start
LH: loop header
LB: loop body
LE: loop exit
PB: predicated region body
PF: predicated region fallthrough
CT: control target
= control target key end

     0   :  { %s4195_s0 = inlined_call_operand.vmem [shape: bf16[100,4,16], index: 0, kind: input, shape index: {}]   ;;  %s4196_s1 = inlined_call_operand.vmem [shape: f32[4,32], index: 1, kind: input, shape index: {}]   ;;  %s4197_s2 = inlined_call_operand.vmem [shape: f32[4,32], index: 2, kind: input, shape index: {}]   ;;  %s4198_s3 = inlined_call_operand.vmem [shape: f32[4,32], index: 3, kind: input, shape index: {}]   ;;  %s4199_s4 = inlined_call_operand.vmem [shape: f32[4,32], index: 4, kind: input, shape index: {}]   ;;  %s4200_s5 = inlined_call_operand.vmem [shape: f32[4,32], index: 5, kind: input, shape index: {}]   ;;  %s4201_s6 = inlined_call_operand.vmem [shape: f32[4,32], index: 6, kind: input, shape index: {}]   ;;  %s4202_s7 = inlined_call_operand.vmem [shape: f32[4,8], index: 7, kind: input, shape index: {}]   ;;  %s4203_s8 = inlined_call_operand.vmem [shape: bf16[16,32], index: 8, kind: input, shape index: {}]   ;;  %s4204_s9 = inlined_call_operand.vmem [shape: bf16[11,32,32], index: 9, kind: input, shape index: {}]   ;;  %s4205_s10 = inlined_call_operand.vmem [shape: bf16[32,8], index: 10, kind: input, shape index: {}]   ;;  %s4206_s11 = inlined_call_operand.vmem [shape: bf16[2,8,8], index: 11, kind: input, shape index: {}]   ;;  %s4207_s12 = inlined_call_operand.vmem [shape: f32[12,32], index: 12, kind: input, shape index: {}]   ;;  %s4208_s13 = inlined_call_operand.vmem [shape: f32[3,8], index: 13, kind: input, shape index: {}]   ;;  %s4209_s14 = inlined_call_operand.vmem [shape: f32[100,4,8], index: 14, kind: output, shape index: {0}]   ;;  %s4210_s15 = inlined_call_operand.hbm [shape: f32[4,32], index: 15, kind: output, shape index: {1}]   ;;  %s4211_s16 = inlined_call_operand.hbm [shape: f32[4,32], index: 16, kind: output, shape index: {2}]   ;;  %s4212_s17 = inlined_call_operand.hbm [shape: f32[4,32], index: 17, kind: output, shape index: {3}]   ;;  %s4213_s18 = inlined_call_operand.hbm [shape: f32[4,32], index: 18, kind: output, shape index: {4}]   ;;  %s4214_s19 = inlined_call_operand.hbm [shape: f32[4,32], index: 19, kind: output, shape index: {5}]   ;;  %s4215_s20 = inlined_call_operand.hbm [shape: f32[4,32], index: 20, kind: output, shape index: {6}]   ;;  %s4216_s21 = inlined_call_operand.hbm [shape: f32[4,8], index: 21, kind: output, shape index: {7}]  }
   0x1   :  { %4235 = sst [smem:[#allocation85_spill]] %s4195_s0 }
   0x2   :  { %4236 = sst [smem:[#allocation86_spill]] %s4196_s1 }
   0x3   :  { %4237 = sst [smem:[#allocation87_spill]] %s4197_s2 }
   0x4   :  { %4238 = sst [smem:[#allocation88_spill]] %s4198_s3 }
   0x5   :  { %4239 = sst [smem:[#allocation89_spill]] %s4199_s4 }
   0x6   :  { %4240 = sst [smem:[#allocation90_spill]] %s4200_s5 }
   0x7   :  { %27 = vsyncpa [#allocation3], 0 }
   0x8   :  { %28 = vsyncpa [#allocation5], 0 }
   0x9   :  { %29 = vsyncpa [#allocation8], 0 }
   0xa   :  { %30 = vsyncpa [#allocation11], 0  ;;  %v3149_v0 = vld [vmem:[%s4203_s8] sm:$0xf]  ;;  %v3154_v1 = vld [vmem:[%s4203_s8 + $0x4] sm:$0xf] }
   0xb   :  { %4241 = vst [vmem:[#allocation17_spill] sm:$0xff] %v3149_v0  ;;  %4242 = vst [vmem:[#allocation18_spill] sm:$0xff] %v3154_v1  ;;  %v3159_v2 = vld [vmem:[%s4204_s9] sm:$0xf]  ;;  %v3164_v3 = vld [vmem:[%s4204_s9 + $0x4] sm:$0xf] }
   0xc   :  { %4243 = vst [vmem:[#allocation19_spill] sm:$0xff] %v3159_v2  ;;  %4244 = vst [vmem:[#allocation20_spill] sm:$0xff] %v3164_v3  ;;  %v3169_v4 = vld [vmem:[%s4204_s9 + $0x8] sm:$0xf]  ;;  %v3174_v5 = vld [vmem:[%s4204_s9 + $0xc] sm:$0xf] }
   0xd   :  { %4245 = vst [vmem:[#allocation21_spill] sm:$0xff] %v3169_v4  ;;  %4246 = vst [vmem:[#allocation22_spill] sm:$0xff] %v3174_v5  ;;  %v3179_v6 = vld [vmem:[%s4204_s9 + $0x10] sm:$0xf]  ;;  %v3184_v7 = vld [vmem:[%s4204_s9 + $0x14] sm:$0xf] }
   0xe   :  { %4247 = vst [vmem:[#allocation23_spill] sm:$0xff] %v3179_v6  ;;  %4248 = vst [vmem:[#allocation24_spill] sm:$0xff] %v3184_v7  ;;  %v3189_v8 = vld [vmem:[%s4204_s9 + $0x18] sm:$0xf]  ;;  %v3194_v9 = vld [vmem:[%s4204_s9 + $0x1c] sm:$0xf] }
   0xf   :  { %4249 = vst [vmem:[#allocation25_spill] sm:$0xff] %v3189_v8  ;;  %4250 = vst [vmem:[#allocation26_spill] sm:$0xff] %v3194_v9  ;;  %v3199_v10 = vld [vmem:[%s4204_s9 + $0x20] sm:$0xf]  ;;  %v3204_v11 = vld [vmem:[%s4204_s9 + $0x24] sm:$0xf] }
  0x10   :  { %4251 = vst [vmem:[#allocation27_spill] sm:$0xff] %v3199_v10  ;;  %4252 = vst [vmem:[#allocation28_spill] sm:$0xff] %v3204_v11  ;;  %v3209_v12 = vld [vmem:[%s4204_s9 + $0x28] sm:$0xf]  ;;  %v3214_v13 = vld [vmem:[%s4204_s9 + $0x2c] sm:$0xf] }
  0x11   :  { %4253 = vst [vmem:[#allocation29_spill] sm:$0xff] %v3209_v12  ;;  %4254 = vst [vmem:[#allocation30_spill] sm:$0xff] %v3214_v13  ;;  %v3219_v14 = vld [vmem:[%s4204_s9 + $0x30] sm:$0xf]  ;;  %v3224_v15 = vld [vmem:[%s4204_s9 + $0x34] sm:$0xf] }
  0x12   :  { %4255 = vst [vmem:[#allocation31_spill] sm:$0xff] %v3219_v14  ;;  %4256 = vst [vmem:[#allocation32_spill] sm:$0xff] %v3224_v15  ;;  %v3229_v16 = vld [vmem:[%s4204_s9 + $0x38] sm:$0xf]  ;;  %v3234_v17 = vld [vmem:[%s4204_s9 + $0x3c] sm:$0xf] }
  0x13   :  { %4257 = vst [vmem:[#allocation33_spill] sm:$0xff] %v3229_v16  ;;  %4258 = vst [vmem:[#allocation34_spill] sm:$0xff] %v3234_v17  ;;  %v3239_v18 = vld [vmem:[%s4204_s9 + $0x40] sm:$0xf]  ;;  %v3244_v19 = vld [vmem:[%s4204_s9 + $0x44] sm:$0xf] }
  0x14   :  { %4259 = vst [vmem:[#allocation35_spill] sm:$0xff] %v3239_v18  ;;  %4260 = vst [vmem:[#allocation36_spill] sm:$0xff] %v3244_v19  ;;  %v3249_v20 = vld [vmem:[%s4204_s9 + $0x48] sm:$0xf]  ;;  %v3254_v21 = vld [vmem:[%s4204_s9 + $0x4c] sm:$0xf] }
  0x15   :  { %4261 = vst [vmem:[#allocation37_spill] sm:$0xff] %v3249_v20  ;;  %4262 = vst [vmem:[#allocation38_spill] sm:$0xff] %v3254_v21  ;;  %v3259_v22 = vld [vmem:[%s4204_s9 + $0x50] sm:$0xf]  ;;  %v3264_v23 = vld [vmem:[%s4204_s9 + $0x54] sm:$0xf] }
  0x16   :  { %4263 = vst [vmem:[#allocation39_spill] sm:$0xff] %v3259_v22  ;;  %4264 = vst [vmem:[#allocation40_spill] sm:$0xff] %v3264_v23  ;;  %v3269_v24 = vld [vmem:[%s4204_s9 + $0x58] sm:$0xf]  ;;  %v3274_v25 = vld [vmem:[%s4204_s9 + $0x5c] sm:$0xf] }
  0x17   :  { %4265 = vst [vmem:[#allocation41_spill] sm:$0xff] %v3269_v24  ;;  %4266 = vst [vmem:[#allocation42_spill] sm:$0xff] %v3274_v25  ;;  %v3279_v26 = vld [vmem:[%s4204_s9 + $0x60] sm:$0xf]  ;;  %v3284_v27 = vld [vmem:[%s4204_s9 + $0x64] sm:$0xf] }
  0x18   :  { %4267 = vst [vmem:[#allocation43_spill] sm:$0xff] %v3279_v26  ;;  %4268 = vst [vmem:[#allocation44_spill] sm:$0xff] %v3284_v27  ;;  %v3289_v28 = vld [vmem:[%s4204_s9 + $0x68] sm:$0xf]  ;;  %v3294_v29 = vld [vmem:[%s4204_s9 + $0x6c] sm:$0xf] }
  0x19   :  { %4269 = vst [vmem:[#allocation45_spill] sm:$0xff] %v3289_v28  ;;  %4270 = vst [vmem:[#allocation46_spill] sm:$0xff] %v3294_v29  ;;  %v3299_v30 = vld [vmem:[%s4204_s9 + $0x70] sm:$0xf]  ;;  %v3304_v31 = vld [vmem:[%s4204_s9 + $0x74] sm:$0xf] }
  0x1a   :  { %4271 = vst [vmem:[#allocation47_spill] sm:$0xff] %v3299_v30  ;;  %4272 = vst [vmem:[#allocation48_spill] sm:$0xff] %v3304_v31  ;;  %v3309_v32 = vld [vmem:[%s4204_s9 + $0x78] sm:$0xf]  ;;  %v3314_v33 = vld [vmem:[%s4204_s9 + $0x7c] sm:$0xf] }
  0x1b   :  { %4273 = vst [vmem:[#allocation49_spill] sm:$0xff] %v3309_v32  ;;  %4274 = vst [vmem:[#allocation50_spill] sm:$0xff] %v3314_v33  ;;  %v3319_v34 = vld [vmem:[%s4204_s9 + $0x80] sm:$0xf]  ;;  %v3324_v35 = vld [vmem:[%s4204_s9 + $0x84] sm:$0xf] }
  0x1c   :  { %4275 = vst [vmem:[#allocation51_spill] sm:$0xff] %v3319_v34  ;;  %4276 = vst [vmem:[#allocation52_spill] sm:$0xff] %v3324_v35  ;;  %v3329_v36 = vld [vmem:[%s4204_s9 + $0x88] sm:$0xf]  ;;  %v3334_v37 = vld [vmem:[%s4204_s9 + $0x8c] sm:$0xf] }
  0x1d   :  { %4277 = vst [vmem:[#allocation53_spill] sm:$0xff] %v3329_v36  ;;  %4278 = vst [vmem:[#allocation54_spill] sm:$0xff] %v3334_v37  ;;  %v3339_v38 = vld [vmem:[%s4204_s9 + $0x90] sm:$0xf]  ;;  %v3344_v39 = vld [vmem:[%s4204_s9 + $0x94] sm:$0xf] }
  0x1e   :  { %4279 = vst [vmem:[#allocation55_spill] sm:$0xff] %v3339_v38  ;;  %4280 = vst [vmem:[#allocation56_spill] sm:$0xff] %v3344_v39  ;;  %v3349_v40 = vld [vmem:[%s4204_s9 + $0x98] sm:$0xf]  ;;  %v3354_v41 = vld [vmem:[%s4204_s9 + $0x9c] sm:$0xf] }
  0x1f   :  { %4281 = vst [vmem:[#allocation57_spill] sm:$0xff] %v3349_v40  ;;  %4282 = vst [vmem:[#allocation58_spill] sm:$0xff] %v3354_v41  ;;  %v3359_v42 = vld [vmem:[%s4204_s9 + $0xa0] sm:$0xf]  ;;  %v3364_v43 = vld [vmem:[%s4204_s9 + $0xa4] sm:$0xf] }
  0x20   :  { %4283 = vst [vmem:[#allocation59_spill] sm:$0xff] %v3359_v42  ;;  %4284 = vst [vmem:[#allocation60_spill] sm:$0xff] %v3364_v43  ;;  %v3369_v44 = vld [vmem:[%s4204_s9 + $0xa8] sm:$0xf]  ;;  %v3374_v45 = vld [vmem:[%s4204_s9 + $0xac] sm:$0xf] }
  0x21   :  { %4285 = vst [vmem:[#allocation61_spill] sm:$0xff] %v3369_v44  ;;  %v3379_v46 = vld [vmem:[%s4205_s10] sm:$0xf]  ;;  %v3384_v47 = vld [vmem:[%s4205_s10 + $0x4] sm:$0xf]  ;;  %s4297_s26 = sld [smem:[#allocation86_spill]] }
  0x22   :  { %4286 = vst [vmem:[#allocation62_spill] sm:$0xff] %v3379_v46  ;;  %4287 = vst [vmem:[#allocation63_spill] sm:$0xff] %v3384_v47  ;;  %v3389_v48 = vld [vmem:[%s4205_s10 + $0x8] sm:$0xf]  ;;  %v3394_v49 = vld [vmem:[%s4205_s10 + $0xc] sm:$0xf] }
  0x23   :  { %4288 = vst [vmem:[#allocation64_spill] sm:$0xff] %v3389_v48  ;;  %4289 = vst [vmem:[#allocation65_spill] sm:$0xff] %v3394_v49  ;;  %v3399_v50 = vld [vmem:[%s4206_s11] sm:$0xf]  ;;  %v3404_v51 = vld [vmem:[%s4206_s11 + $0x4] sm:$0xf] }
  0x24   :  { %4290 = vst [vmem:[#allocation66_spill] sm:$0xff] %v3399_v50  ;;  %4291 = vst [vmem:[#allocation67_spill] sm:$0xff] %v3404_v51  ;;  %v3409_v52 = vld [vmem:[%s4207_s12] ss:$0 sm:$0xff]  ;;  %v3414_v53 = vld [vmem:[%s4207_s12 + $0x1] ss:$0 sm:$0xff] }
  0x25   :  { %v3419_v54 = vld [vmem:[%s4207_s12 + $0x2] ss:$0 sm:$0xff]  ;;  %v3424_v55 = vld [vmem:[%s4207_s12 + $0x3] ss:$0 sm:$0xff]  ;;  %v3429_v56 = vld [vmem:[%s4207_s12 + $0x4] sm:$0x1] }
  0x26   :  { %4292 = vst [vmem:[#allocation68_spill] sm:$0xff] %v3419_v54  ;;  %4293 = vst [vmem:[#allocation69_spill] sm:$0xff] %v3424_v55  ;;  %v3434_v57 = vld [vmem:[%s4207_s12 + $0x5] ss:$0 sm:$0xff]  ;;  %v3439_v58 = vld [vmem:[%s4207_s12 + $0x6] sm:$0x1] }
  0x27   :  { %v3444_v59 = vld [vmem:[%s4207_s12 + $0x7] ss:$0 sm:$0xff]  ;;  %v3449_v60 = vld [vmem:[%s4207_s12 + $0x8] sm:$0x1]  ;;  %v3454_v61 = vld [vmem:[%s4207_s12 + $0x9] ss:$0 sm:$0xff] }
  0x28   :  { %v3459_v62 = vld [vmem:[%s4207_s12 + $0xa] sm:$0x1]  ;;  %v3464_v63 = vld [vmem:[%s4207_s12 + $0xb] ss:$0 sm:$0xff]  ;;  %v3469_v50 = vld [vmem:[%s4208_s13] ss:$0 sm:$0xff] }
  0x29   :  { %4294 = vst [vmem:[#allocation70_spill] sm:$0xff] %v3469_v50  ;;  %v3474_v55 = vld [vmem:[%s4208_s13 + $0x1] sm:$0x1]  ;;  %v3479_v54 = vld [vmem:[%s4208_s13 + $0x2] ss:$0 sm:$0xff]  ;;  %s4298_s9 = sld [smem:[#allocation87_spill]] }
  0x2a   :  { %4295 = vst [vmem:[#allocation71_spill] sm:$0xff] %v3474_v55  ;;  %4296 = vst [vmem:[#allocation72_spill] sm:$0xff] %v3479_v54  ;;  %v138_v48 = vld [vmem:[%s4297_s26] sm:$0xf]   ;;  %s4299_s29 = sld [smem:[#allocation88_spill]]  ;;  %s4300_s30 = sld [smem:[#allocation89_spill]] }
  0x2b   :  { %s4301_s13 = sld [smem:[#allocation90_spill]]  ;;  %v143_v46 = vld [vmem:[%s4201_s6] sm:$0xf]   ;;  %s3516_s1 = smov 0  }
  0x2c   :  { %v144_v47 = vld [vmem:[%s4202_s7] sm:$0xf]  }
  0x2f   :  { %v139_v49 = vld [vmem:[%s4298_s9] sm:$0xf]  }
  0x30   :  { %v140_v50 = vld [vmem:[%s4299_s29] sm:$0xf]  }
  0x31   :  { %v141_v55 = vld [vmem:[%s4300_s30] sm:$0xf]  }
  0x32   :  { %v142_v54 = vld [vmem:[%s4301_s13] sm:$0xf]  }
  0x33 LB: > { %4302 = vst [vmem:[#allocation73_spill] sm:$0xff] %v2997_v47  ;;  %4303 = vst [vmem:[#allocation74_spill] sm:$0xff] %v3005_v54  ;;  %v4304_v1 = vld [vmem:[#allocation18_spill] sm:$0xff]  ;;  %v4305_v0 = vld [vmem:[#allocation17_spill] sm:$0xff]  ;;  %v4225_v51 = vmov 0.0   ;;  %s2352_s6 = sshll.u32 %s3025_s1, 2  ;;  %s3025_s1 = sphi %s3516_s1, %s150_s1   ;;  %v3021_v48 = vphi %v138_v48, %v4396_v48   ;;  %v3017_v49 = vphi %v139_v49, %v4395_v49   ;;  %v3013_v50 = vphi %v140_v50, %v4394_v50   ;;  %v3009_v55 = vphi %v141_v55, %v4393_v55   ;;  %v3005_v54 = vphi %v142_v54, %v4392_v54   ;;  %v3001_v46 = vphi %v143_v46, %v4391_v46   ;;  %v2997_v47 = vphi %v144_v47, %v4390_v47  }
  0x34   : > { %v3544_v47 = vcombine.low %v4305_v0, %v4304_v1  ;;  %v4306_v3 = vld [vmem:[#allocation20_spill] sm:$0xff]  ;;  %v4307_v2 = vld [vmem:[#allocation19_spill] sm:$0xff]  ;;  %2440 = vmatprep.subr.bf16.mxu0 %v4225_v51  ;;  %2446 = vmatprep.subr.bf16.mxu1 %v4225_v51  ;;  %vm170_vm0 = vcmask 130048   ;;  %v4309_v5 = vld [vmem:[#allocation22_spill] sm:$0xff]  ;;  %vm3028_vm1 = vmmov 0   ;;  %s4312_s2 = sld [smem:[#allocation85_spill]]  ;;  %v163_v1 = vpack.c.bf16 %v3017_v49, %v3017_v49 }
  0x35   : > { %v3548_v54 = vcombine.low %v4307_v2, %v4306_v3  ;;  %v4310_v4 = vld [vmem:[#allocation21_spill] sm:$0xff]  ;;  %2442 = vmatprep.mubr.msk.bf16.mxu0 %vm3028_vm1, %v4225_v51  ;;  %2450 = vmatprep.mubr.msk.bf16.mxu1 %vm3028_vm1, %v4225_v51  ;;  %vm259_vm2 = vcmask 261120   ;;  %v4313_v7 = vld [vmem:[#allocation24_spill] sm:$0xff]  ;;  %v4314_v6 = vld [vmem:[#allocation23_spill] sm:$0xff]  ;;  %vm214_vm3 = vcmask 257024   ;;  %vm1114_vm5 = vcmask 1043456  }
  0x36   : > { %2441 = vmatpush3.bf16.msra.mxu0 %v3544_v47  ;;  %v3557_v40 = vcombine.low %v4310_v4, %v4309_v5  ;;  %v3583_v2 = vcombine.low %v4314_v6, %v4313_v7  ;;  %v4316_v9 = vld [vmem:[#allocation26_spill] sm:$0xff]  ;;  %v4317_v8 = vld [vmem:[#allocation25_spill] sm:$0xff]  ;;  %v4319_v15 = vld [vmem:[#allocation32_spill] sm:$0xff]  ;;  %v419_v6 = vpack.c.bf16 %v3021_v48, %v3021_v48  ;;  %vm1110_vm6 = vcmask 64512   ;;  %s2353_s26 = sshll.u32 %s3025_s1, 3  ;;  %s150_s1 = sadd.s32 1, %s3025_s1  }
  0x37   : > { %4308 = vst [vmem:[#allocation75_spill] sm:$0xff] %v3548_v54  ;;  %2447 = vmatpush3.bf16.msra.mxu1 %v3548_v54  ;;  %2454 = vmatprep.subr.bf16.mxu0 %v4225_v51  ;;  %v4320_v14 = vld [vmem:[#allocation31_spill] sm:$0xff]  ;;  %v4322_v11 = vld [vmem:[#allocation28_spill] sm:$0xff]  ;;  %v4325_v17 = vld [vmem:[#allocation34_spill] sm:$0xff]  ;;  %vm1076_vm8 = vcmask 60416   ;;  %s3931_s9 = scalar_lea.vmem %s4209_s14, %s2353_s26  ;;  %p147_p0 = scmp.ge.s32.totalorder %s150_s1, 50  }
  0x38   : > { %4311 = vst [vmem:[#allocation76_spill] sm:$0xff] %v3557_v40  ;;  %2448 = vmatprep.subr.bf16.mxu1 %v4225_v51  ;;  %4315 = vst [vmem:[#allocation77_spill] sm:$0xff] %v3583_v2  ;;  %v3598_v3 = vcombine.low %v4320_v14, %v4319_v15  ;;  %v4323_v10 = vld [vmem:[#allocation27_spill] sm:$0xff]  ;;  %v4326_v16 = vld [vmem:[#allocation33_spill] sm:$0xff]  ;;  %s3029_s14 = smov (%p147_p0), [#allocation4]   ;;  %s3030_s28 = smov (%p147_p0), [#allocation7]  }
  0x39   : > { %v3603_v4 = vcombine.low %v4323_v10, %v4322_v11  ;;  %v3608_v5 = vcombine.low %v4326_v16, %v4325_v17  ;;  %v4328_v13 = vld [vmem:[#allocation30_spill] sm:$0xff]  ;;  %v4329_v12 = vld [vmem:[#allocation29_spill] sm:$0xff]  ;;  %v4331_v23 = vld [vmem:[#allocation40_spill] sm:$0xff]  ;;  %s2104_s3 = sshll.u32 (%p147_p0), %s3029_s14, 4  ;;  %s2124_s29 = sshll.u32 (%p147_p0), %s3030_s28, 4  ;;  %s2105_s3 = int_to_ptr.vmem [resolvable:$true] %s2104_s3  ;;  %s2125_s29 = int_to_ptr.vmem [resolvable:$true] %s2124_s29 }
  0x3a   : > { %s3564_s25 = scalar_lea.vmem %s4312_s2, %s2352_s6  ;;  %4321 = vst [vmem:[#allocation79_spill] sm:$0xff] %v3598_v3  ;;  %v4332_v22 = vld [vmem:[#allocation39_spill] sm:$0xff]  ;;  %v4334_v25 = vld [vmem:[#allocation42_spill] sm:$0xff]  ;;  %v4335_v24 = vld [vmem:[#allocation41_spill] sm:$0xff]  ;;  %s2801_s0 = scalar_lea.vmem (%p147_p0), %s2105_s3, 64 }
  0x3b   : > { %v162_v0 = vld [vmem:[%s3564_s25] sm:$0x3]  ;;  %2449 = vmatpush3.bf16.msra.mxu1 %v3557_v40  ;;  %4324 = vst [vmem:[#allocation80_spill] sm:$0xff] %v3603_v4  ;;  %4327 = vst [vmem:[#allocation81_spill] sm:$0xff] %v3608_v5  ;;  %v3622_v7 = vcombine.low %v4332_v22, %v4331_v23  ;;  %v4337_v19 = vld [vmem:[#allocation36_spill] sm:$0xff]  ;;  %p2802_p1 = scmp.ne.s32.totalorder (%p147_p0), %s2105_s3, %s2801_s0  ;;  %p2806_p2 = scmp.lt.s32.totalorder (%p147_p0), %s2105_s3, %s2105_s3 }
  0x3c   : > { %2443 = vmatmul.mubr.msk.bf16.vlgmr.msra.gmra.mrb[0].mxu0 %vm170_vm0, %v162_v0  ;;  %2462 = vmatprep.subr.bf16.mxu1 %v4225_v51  ;;  %v3589_v0 = vcombine.low %v4317_v8, %v4316_v9  ;;  %v3633_v8 = vcombine.low %v4335_v24, %v4334_v25  ;;  %v541_v9 = vpack.c.bf16 %v3013_v50, %v3013_v50  ;;  %v4338_v18 = vld [vmem:[#allocation35_spill] sm:$0xff]  ;;  %v4339_v21 = vld [vmem:[#allocation38_spill] sm:$0xff]  ;;  %v4340_v20 = vld [vmem:[#allocation37_spill] sm:$0xff]  ;;  %p2807_p3 = scmp.lt.s32.totalorder (%p147_p0), %s2801_s0, %s2801_s0 }
  0x3d   : > { %2458 = vmatprep.mubr.msk.bf16.mxu0 %vm3028_vm1, %v4225_v51  ;;  %2455 = vmatpush3.bf16.msra.mxu0 %v3583_v2  ;;  %4333 = vst [vmem:[#allocation83_spill] sm:$0xff] %v3622_v7  ;;  %v4342_v27 = vld [vmem:[#allocation44_spill] sm:$0xff]  ;;  %v4343_v26 = vld [vmem:[#allocation43_spill] sm:$0xff]  ;;  %v4344_v29 = vld [vmem:[#allocation46_spill] sm:$0xff] }
  0x3e   : > { %2451 = vmatmul.mubr.msk.bf16.vlgmr.msra.gmra.mrb[0].mxu1 %vm259_vm2, %v163_v1  ;;  %2456 = vmatprep.subr.bf16.mxu0 %v4225_v51  ;;  %4318 = vst [vmem:[#allocation78_spill] sm:$0xff] %v3589_v0  ;;  %4336 = vst [vmem:[#allocation84_spill] sm:$0xff] %v3633_v8  ;;  %v4345_v28 = vld [vmem:[#allocation45_spill] sm:$0xff]  ;;  %v4346_v35 = vld [vmem:[#allocation52_spill] sm:$0xff]  ;;  %p2808_p4 = por (%p147_p0), %p2807_p3, %p2806_p2 }
  0x3f   : > { %2466 = vmatprep.mubr.msk.bf16.mxu1 %vm3028_vm1, %v4225_v51  ;;  %2463 = vmatpush3.bf16.msra.mxu1 %v3598_v3  ;;  %v4347_v34 = vld [vmem:[#allocation51_spill] sm:$0xff]  ;;  %v4348_v31 = vld [vmem:[#allocation48_spill] sm:$0xff]  ;;  %v4350_v37 = vld [vmem:[#allocation54_spill] sm:$0xff] }
  0x40   : > { %2464 = vmatprep.subr.bf16.mxu1 %v4225_v51  ;;  %v4349_v30 = vld [vmem:[#allocation47_spill] sm:$0xff]  ;;  %v4351_v36 = vld [vmem:[#allocation53_spill] sm:$0xff]  ;;  %v4352_v33 = vld [vmem:[#allocation50_spill] sm:$0xff]  ;;  %p2809_p5 = pnand (%p147_p0), %p2808_p4, %p2802_p1 }
  0x41   : > { %2457 = vmatpush3.bf16.msra.mxu0 %v3589_v0  ;;  %v4353_v32 = vld [vmem:[#allocation49_spill] sm:$0xff]  ;;  %v4354_v43 = vld [vmem:[#allocation60_spill] sm:$0xff]  ;;  %v4355_v42 = vld [vmem:[#allocation59_spill] sm:$0xff] }
  0x42   : > { %2470 = vmatprep.subr.bf16.mxu0 %v4225_v51  ;;  %v4356_v44 = vld [vmem:[#allocation61_spill] sm:$0xff]  ;;  %v4357_v39 = vld [vmem:[#allocation56_spill] sm:$0xff]  ;;  %v4358_v38 = vld [vmem:[#allocation55_spill] sm:$0xff] }
  0x43   : > { %2465 = vmatpush3.bf16.msra.mxu1 %v3608_v5  ;;  %v4359_v41 = vld [vmem:[#allocation58_spill] sm:$0xff] }
  0x44   : > { %2459 = vmatmul.mubr.msk.bf16.vlgmr.msra.gmra.mrb[4].mxu0 %vm259_vm2, %v163_v1  ;;  %v3615_v1 = vcombine.low %v4329_v12, %v4328_v13  ;;  %2478 = vmatprep.subr.bf16.mxu1 %v4225_v51 }
  0x45   : > { %2474 = vmatprep.mubr.msk.bf16.mxu0 %vm3028_vm1, %v4225_v51  ;;  %2471 = vmatpush3.bf16.msra.mxu0 %v3603_v4 }
  0x46   : > { %2472 = vmatprep.subr.bf16.mxu0 %v4225_v51  ;;  %4330 = vst [vmem:[#allocation82_spill] sm:$0xff] %v3615_v1  ;;  %2467 = vmatmul.mubr.msk.bf16.vlgmr.msra.gmra.mrb[4].mxu1 %vm259_vm2, %v419_v6 }
  0x47   : > { %2479 = vmatpush3.bf16.msra.mxu1 %v3622_v7  ;;  %2482 = vmatprep.mubr.msk.bf16.mxu1 %vm3028_vm1, %v4225_v51 }
  0x48   : > { %2480 = vmatprep.subr.bf16.mxu1 %v4225_v51 }
  0x49   : > { %2473 = vmatpush3.bf16.msra.mxu0 %v3615_v1 }
  0x4a   : > { %2486 = vmatprep.subr.bf16.mxu0 %v4225_v51 }
  0x4b   : > { %2481 = vmatpush3.bf16.msra.mxu1 %v3633_v8 }
  0x4c   : > { %2494 = vmatprep.subr.bf16.mxu1 %v4225_v51 }
  0x4e   : > { %2483 = vmatmul.mubr.msk.bf16.vlgmr.msra.gmra.mrb[8].mxu1 %vm259_vm2, %v541_v9 }
  0x4f   : > { %2498 = vmatprep.mubr.msk.bf16.mxu1 %vm3028_vm1, %v4225_v51 }
 0x10f   : > { %v208_v6 = vpop.f32.mrb[0].mxu0 }
 0x110   : > { %v215_v10 = vsel %vm214_vm3, %v208_v6, 0.0  ;;  %v2444_v11 = vpop.f32.mrb[1].mxu0 }
 0x111   : > { %v216_v12 = vrot.slane %v215_v10, 4  ;;  %v211_v13 = vpop.f32.mrb[2].mxu0  ;;  %v297_v16 = vpop.f32.mrb[0].mxu1 }
 0x112   : > { %v2445_v14 = vpop.f32.mrb[3].mxu0  ;;  %v303_v17 = vsel %vm214_vm3, %v297_v16, 0.0  ;;  %v2452_v22 = vpop.f32.mrb[1].mxu1 }
 0x113   : > { %v217_v15 = vadd.f32 %v216_v12, %v215_v10  ;;  %v304_v24 = vrot.slane %v303_v17, 4  ;;  %v300_v25 = vpop.f32.mrb[2].mxu1 }
 0x114   : > { %v2453_v9 = vpop.f32.mrb[3].mxu1 }
 0x115   : > { %v218_v23 = vrot.slane %v217_v15, 2  ;;  %v305_v7 = vadd.f32 %v304_v24, %v303_v17 }
 0x117   : > { %v219_v8 = vadd.f32 %v218_v23, %v217_v15  ;;  %v306_v5 = vrot.slane %v305_v7, 2 }
 0x119   : > { %v220_v51 = vrot.slane %v219_v8, 1  ;;  %v307_v40 = vadd.f32 %v306_v5, %v305_v7 }
 0x11b   : > { %v221_v3 = vadd.f32 %v220_v51, %v219_v8  ;;  %v308_v11 = vrot.slane %v307_v40, 1 }
 0x11d   : > { %v223_v54 = vmul.f32 0.25, %v221_v3  ;;  %v309_v13 = vadd.f32 %v308_v11, %v307_v40 }
 0x11f   : > { %v224_v1 = vsub.f32 %v208_v6, %v223_v54  ;;  %v310_v10 = vmul.f32 0.25, %v309_v13 }
 0x121   : > { %v225_v14 = vmul.f32 %v224_v1, %v224_v1  ;;  %v311_v4 = vsub.f32 %v297_v16, %v310_v10  ;;  %v237_v16 = vlaneseq }
 0x123   : > { %v226_v12 = vsel %vm214_vm3, %v225_v14, 0.0  ;;  %v312_v0 = vmul.f32 %v311_v4, %v311_v4  ;;  %v238_v13 = vshrl.u32 %v237_v16, 7 }
 0x124   : > { %v227_v22 = vrot.slane %v226_v12, 4 }
 0x125   : > { %v313_v25 = vsel %vm214_vm3, %v312_v0, 0.0  ;;  %v3646_v14 = vsub.s32 0, %v238_v13 }
 0x126   : > { %v228_v2 = vadd.f32 %v227_v22, %v226_v12  ;;  %v314_v17 = vrot.slane %v313_v25, 4 }
 0x128   : > { %v229_v15 = vrot.slane %v228_v2, 2  ;;  %v315_v24 = vadd.f32 %v314_v17, %v313_v25 }
 0x12a   : > { %v230_v23 = vadd.f32 %v229_v15, %v228_v2  ;;  %v316_v5 = vrot.slane %v315_v24, 2 }
 0x12c   : > { %v231_v8 = vrot.slane %v230_v23, 1  ;;  %v317_v7 = vadd.f32 %v316_v5, %v315_v24  ;;  %v3656_v5 = vcombine.low %v4338_v18, %v4337_v19 }
 0x12e   : > { %v232_v3 = vadd.f32 %v231_v8, %v230_v23  ;;  %v318_v40 = vrot.slane %v317_v7, 1 }
 0x130   : > { %v233_v51 = vmul.f32 0.25, %v232_v3  ;;  %v319_v6 = vadd.f32 %v318_v40, %v317_v7  ;;  %v4341_v7 = vmov 0.0  }
 0x132   : > { %v234_v54 = vadd.f32 1e-05, %v233_v51  ;;  %v320_v9 = vmul.f32 0.25, %v319_v6  ;;  %v469_v6 = vpop.f32.mrb[4].mxu1 }
 0x134   : > { %2741 = vrsqrt.f32 %v234_v54  ;;  %v321_v11 = vadd.f32 1e-05, %v320_v9  ;;  %v2468_v9 = vpop.f32.mrb[5].mxu1 }
 0x135   : > { %v472_v16 = vpop.f32.mrb[6].mxu1 }
 0x136   : > { %2743 = vrsqrt.f32 %v321_v11  ;;  %v2469_v11 = vpop.f32.mrb[7].mxu1 }
 0x137   : > { %v591_v13 = vpop.f32.mrb[8].mxu1 }
 0x13e   : > { %v2742_v0 = vpop.eup %2741 }
 0x13f   : > { %v236_v2 = vmul.f32 %v2742_v0, %v3429_v56  ;;  %v2484_v0 = vpop.f32.mrb[9].mxu1 }
 0x140   : > { %v2744_v12 = vpop.eup %2743 }
 0x141   : > { %v240_v10 = vrot.slane %v236_v2, %v3646_v14  ;;  %v323_v22 = vmul.f32 %v2744_v12, %v3439_v58  ;;  %v594_v2 = vpop.f32.mrb[10].mxu1  ;;  %v3676_v12 = vcombine.low %v4343_v26, %v4342_v27 }
 0x143   : > { %v241_v25 = vmul.f32 %v240_v10, %v224_v1  ;;  %v327_v15 = vrot.slane %v323_v22, %v3646_v14  ;;  %v3662_v1 = vcombine.low %v4340_v20, %v4339_v21  ;;  %v2485_v10 = vpop.f32.mrb[11].mxu1  ;;  %2495 = vmatpush3.bf16.msra.mxu1 %v3676_v12  ;;  %v3681_v22 = vcombine.low %v4345_v28, %v4344_v29 }
 0x144   : > { %2496 = vmatprep.subr.bf16.mxu1 %v4341_v7 }
 0x145   : > { %v328_v17 = vmul.f32 %v327_v15, %v311_v4  ;;  %v246_v23 = vadd.f32 %v3434_v57, %v241_v25  ;;  %v3672_v4 = vpop.f32.mrb[4].mxu0 }
 0x146   : > { %v2460_v51 = vpop.f32.mrb[5].mxu0 }
 0x147   : > { %v333_v24 = vadd.f32 %v3444_v59, %v328_v17  ;;  %v384_v40 = vpop.f32.mrb[6].mxu0  ;;  %2497 = vmatpush3.bf16.msra.mxu1 %v3681_v22 }
 0x148   : > { %v2461_v54 = vpop.f32.mrb[7].mxu0  ;;  %2510 = vmatprep.subr.bf16.mxu1 %v4341_v7 }
 0x149   : > { %v334_v8 = vadd.f32 %v333_v24, %v246_v23 }
 0x14b   : > { %v418_v3 = vpack.c.bf16 %v334_v8, %v334_v8 }
 0x14d   : > { %2475 = vmatmul.mubr.msk.bf16.vlgmr.msra.gmra.mrb[8].mxu0 %vm259_vm2, %v418_v3 }
 0x14e   : > { %2487 = vmatpush3.bf16.msra.mxu0 %v3656_v5  ;;  %2490 = vmatprep.mubr.msk.bf16.mxu0 %vm3028_vm1, %v4341_v7 }
 0x14f   : > { %2488 = vmatprep.subr.bf16.mxu0 %v4341_v7 }
 0x152   : > { %2489 = vmatpush3.bf16.msra.mxu0 %v3662_v1 }
 0x153   : > { %2502 = vmatprep.subr.bf16.mxu0 %v4341_v7 }
 0x155   : > { %2491 = vmatmul.mubr.msk.bf16.vlgmr.msra.gmra.mrb[12].mxu0 %vm259_vm2, %v418_v3 }
 0x156   : > { %2506 = vmatprep.mubr.msk.bf16.mxu0 %vm3028_vm1, %v4341_v7 }
 0x220   : > { %v524_v25 = vpop.f32.mrb[8].mxu0 }
 0x221   : > { %v525_v15 = vadd.f32 %v524_v25, %v469_v6  ;;  %v2476_v17 = vpop.f32.mrb[9].mxu0 }
 0x222   : > { %v527_v23 = vpop.f32.mrb[10].mxu0 }
 0x223   : > { %v534_v24 = vadd.f32 %v3409_v52, %v525_v15  ;;  %v2477_v3 = vpop.f32.mrb[11].mxu0  ;;  %v664_v15 = vsub.f32 %v334_v8, %v3021_v48 }
 0x225   : > { %v2284_v51 = vmul.f32 -1.442695, %v534_v24 }
 0x227   : > { %2745 = vpow2.f32 %v2284_v51 }
 0x228   : > { %v643_v40 = vpop.f32.mrb[12].mxu0 }
 0x229   : > { %v644_v54 = vadd.f32 %v643_v40, %v591_v13  ;;  %v2492_v9 = vpop.f32.mrb[13].mxu0 }
 0x22a   : > { %v646_v16 = vpop.f32.mrb[14].mxu0 }
 0x22b   : > { %v653_v11 = vadd.f32 %v3414_v53, %v644_v54  ;;  %v2493_v0 = vpop.f32.mrb[15].mxu0 }
 0x22c   : > { %v3728_v0 = vcombine.low %v4353_v32, %v4352_v33 }
 0x22d   : > { %v2292_v2 = vmul.f32 -1.442695, %v653_v11 }
 0x22f   : > { %2747 = vpow2.f32 %v2292_v2  ;;  %v764_v2 = vpack.c.bf16 %v3009_v55, %v3009_v55 }
 0x231   : > { %v2746_v10 = vpop.eup %2745 }
 0x232   : > { %v538_v18 = vadd.f32 1.0, %v2746_v10  ;;  %v3735_v10 = vcombine.low %v4355_v42, %v4354_v43 }
 0x234   : > { %2749 = vrcp.f32 %v538_v18 }
 0x239   : > { %v2748_v6 = vpop.eup %2747 }
 0x23a   : > { %v657_v25 = vadd.f32 1.0, %v2748_v6  ;;  %v3746_v6 = vcombine.low %v4356_v44, %v3374_v45 }
 0x23c   : > { %2751 = vrcp.f32 %v657_v25  ;;  %v886_v25 = vpack.c.bf16 %v3001_v46, %v3001_v46 }
 0x23e   : > { %v2750_v17 = vpop.eup %2749 }
 0x23f   : > { %v665_v23 = vmul.f32 %v2750_v17, %v664_v15  ;;  %v387_v15 = vsel %vm214_vm3, %v3672_v4, 0.0 }
 0x240   : > { %v388_v17 = vrot.slane %v387_v15, 4 }
 0x241   : > { %v3695_v9 = vadd.f32 %v3021_v48, %v665_v23  ;;  %v3711_v48 = vcombine.low %v4347_v34, %v4346_v35 }
 0x242   : > { %v389_v23 = vadd.f32 %v388_v17, %v387_v15 }
 0x243   : > { %2503 = vmatpush3.bf16.msra.mxu0 %v3711_v48 }
 0x244   : > { %2504 = vmatprep.subr.bf16.mxu0 %v4341_v7 }
 0x246   : > { %v2752_v24 = vpop.eup %2751 }
 0x247   : > { %v661_v3 = vsub.f32 1.0, %v2752_v24  ;;  %v660_v13 = vmul.f32 %v3013_v50, %v2752_v24  ;;  %v3721_v50 = vcombine.low %v4351_v36, %v4350_v37  ;;  %v390_v24 = vrot.slane %v389_v23, 2 }
 0x249   : > { %v662_v51 = vmul.f32 %v3017_v49, %v661_v3  ;;  %v3716_v49 = vcombine.low %v4349_v30, %v4348_v31  ;;  %2505 = vmatpush3.bf16.msra.mxu0 %v3721_v50  ;;  %v391_v3 = vadd.f32 %v390_v24, %v389_v23 }
 0x24a   : > { %2518 = vmatprep.subr.bf16.mxu0 %v4341_v7 }
 0x24b   : > { %v3691_v40 = vadd.f32 %v662_v51, %v660_v13  ;;  %v392_v13 = vrot.slane %v391_v3, 1 }
 0x24c   : > { %2507 = vmatmul.mubr.msk.bf16.vlgmr.msra.gmra.mrb[16].mxu0 %vm259_vm2, %v764_v2 }
 0x24d   : > { %v667_v54 = vmul.f32 1.8, %v3691_v40  ;;  %2519 = vmatpush3.bf16.msra.mxu0 %v3735_v10  ;;  %2522 = vmatprep.mubr.msk.bf16.mxu0 %vm3028_vm1, %v4341_v7  ;;  %v393_v51 = vadd.f32 %v392_v13, %v391_v3 }
 0x24e   : > { %2520 = vmatprep.subr.bf16.mxu0 %v4341_v7 }
 0x24f   : > { %v668_v18 = vadd.f32 0.1, %v667_v54  ;;  %v394_v54 = vmul.f32 0.25, %v393_v51 }
 0x251   : > { %v669_v16 = vsub.f32 %v3695_v9, %v668_v18  ;;  %2521 = vmatpush3.bf16.msra.mxu0 %v3746_v6  ;;  %v395_v18 = vsub.f32 %v3672_v4, %v394_v54 }
 0x252   : > { %2534 = vmatprep.subr.bf16.mxu0 %v4341_v7 }
 0x253   : > { %vm670_vm4 = vcmp.gt.f32.partialorder %v669_v16, 0.0  ;;  %v396_v16 = vmul.f32 %v395_v18, %v395_v18 }
 0x254   : > { %v3699_v8 = vsel %vm670_vm4, 1.0, %v4341_v7  ;;  %2523 = vmatmul.mubr.msk.bf16.vlgmr.msra.gmra.mrb[20].mxu0 %vm259_vm2, %v886_v25 }
 0x255   : > { %v3703_v11 = vpack.c.bf16 %v3699_v8, %v3699_v8  ;;  %2538 = vmatprep.mubr.msk.bf16.mxu0 %vm3028_vm1, %v4341_v7  ;;  %v397_v2 = vsel %vm214_vm3, %v396_v16, 0.0 }
 0x256   : > { %v398_v19 = vrot.slane %v397_v2, 4 }
 0x257   : > { %2499 = vmatmul.mubr.msk.bf16.vlgmr.msra.gmra.mrb[12].mxu1 %vm259_vm2, %v3703_v11 }
 0x258   : > { %2514 = vmatprep.mubr.msk.bf16.mxu1 %vm3028_vm1, %v4341_v7  ;;  %2511 = vmatpush3.bf16.msra.mxu1 %v3716_v49  ;;  %v399_v20 = vadd.f32 %v398_v19, %v397_v2 }
 0x259   : > { %2512 = vmatprep.subr.bf16.mxu1 %v4341_v7 }
 0x25a   : > { %v400_v17 = vrot.slane %v399_v20, 2 }
 0x25c   : > { %2513 = vmatpush3.bf16.msra.mxu1 %v3728_v0  ;;  %v401_v3 = vadd.f32 %v400_v17, %v399_v20 }
 0x25d   : > { %2526 = vmatprep.subr.bf16.mxu1 %v4341_v7 }
 0x25e   : > { %v402_v4 = vrot.slane %v401_v3, 1 }
 0x260   : > { %v403_v16 = vadd.f32 %v402_v4, %v401_v3 }
 0x262   : > { %v404_v2 = vmul.f32 0.25, %v403_v16 }
 0x264   : > { %v405_v33 = vadd.f32 1e-05, %v404_v2 }
 0x266   : > { %2753 = vrsqrt.f32 %v405_v33 }
 0x270   : > { %v2754_v17 = vpop.eup %2753 }
 0x32a   : > { %v725_v25 = vpop.f32.mrb[12].mxu1 }
 0x32b   : > { %v731_v21 = vsel %vm214_vm3, %v725_v25, 0.0  ;;  %v2500_v26 = vpop.f32.mrb[13].mxu1 }
 0x32c   : > { %v732_v27 = vrot.slane %v731_v21, 4  ;;  %v728_v28 = vpop.f32.mrb[14].mxu1 }
 0x32d   : > { %v2501_v29 = vpop.f32.mrb[15].mxu1 }
 0x32e   : > { %v733_v15 = vadd.f32 %v732_v27, %v731_v21 }
 0x330   : > { %v734_v23 = vrot.slane %v733_v15, 2 }
 0x332   : > { %v735_v24 = vadd.f32 %v734_v23, %v733_v15  ;;  %v407_v23 = vmul.f32 %v2754_v17, %v3459_v62 }
 0x334   : > { %v736_v13 = vrot.slane %v735_v24, 1 }
 0x336   : > { %v737_v51 = vadd.f32 %v736_v13, %v735_v24 }
 0x338   : > { %v738_v54 = vmul.f32 0.25, %v737_v51 }
 0x33a   : > { %v739_v30 = vsub.f32 %v725_v25, %v738_v54  ;;  %v411_v25 = vrot.slane %v407_v23, %v3646_v14  ;;  %v3771_v54 = vcombine.low %v4358_v38, %v4357_v39 }
 0x33c   : > { %v740_v31 = vmul.f32 %v739_v30, %v739_v30  ;;  %v412_v3 = vmul.f32 %v411_v25, %v395_v18  ;;  %v4360_v18 = vld [vmem:[#allocation57_spill] sm:$0xff] }
 0x33e   : > { %v741_v19 = vsel %vm214_vm3, %v740_v31, 0.0  ;;  %v417_v51 = vadd.f32 %v3464_v63, %v412_v3 }
 0x33f   : > { %v742_v32 = vrot.slane %v741_v19, 4 }
 0x341   : > { %v743_v26 = vadd.f32 %v742_v32, %v741_v19  ;;  %v4361_v19 = vld [vmem:[#allocation67_spill] sm:$0xff] }
 0x342   : > { %v3788_v2 = vsel %vm1114_vm5, %v4361_v19, 0 }
 0x343   : > { %v744_v28 = vrot.slane %v743_v26, 2 }
 0x345   : > { %v745_v29 = vadd.f32 %v744_v28, %v743_v26  ;;  %v4362_v26 = vld [vmem:[#allocation73_spill] sm:$0xff] }
 0x346   : > { %v1109_v28 = vpack.c.bf16 %v4362_v26, %v4362_v26 }
 0x347   : > { %v746_v21 = vrot.slane %v745_v29, 1 }
 0x349   : > { %v747_v27 = vadd.f32 %v746_v21, %v745_v29  ;;  %v2326_v29 = vld [vmem:[%s3564_s25 + $0x2] sm:$0x3] }
 0x34a   : > { %v4363_v21 = vld [vmem:[#allocation77_spill] sm:$0xff] }
 0x34b   : > { %v748_v15 = vmul.f32 0.25, %v747_v27  ;;  %v4364_v27 = vld [vmem:[#allocation78_spill] sm:$0xff] }
 0x34d   : > { %v749_v20 = vadd.f32 1e-05, %v748_v15  ;;  %v4366_v15 = vld [vmem:[#allocation82_spill] sm:$0xff] }
 0x34f   : > { %2755 = vrsqrt.f32 %v749_v20  ;;  %v814_v20 = vpop.f32.mrb[16].mxu0 }
 0x350   : > { %v2508_v17 = vpop.f32.mrb[17].mxu0 }
 0x351   : > { %v817_v23 = vpop.f32.mrb[18].mxu0 }
 0x352   : > { %v2509_v25 = vpop.f32.mrb[19].mxu0 }
 0x359   : > { %v2756_v24 = vpop.eup %2755 }
 0x35a   : > { %v751_v31 = vmul.f32 %v2756_v24, %v3449_v60  ;;  %v936_v24 = vpop.f32.mrb[20].mxu0 }
 0x35c   : > { %v755_v32 = vrot.slane %v751_v31, %v3646_v14  ;;  %v2524_v31 = vpop.f32.mrb[21].mxu0 }
 0x35d   : > { %v939_v3 = vpop.f32.mrb[22].mxu0 }
 0x35e   : > { %v756_v13 = vmul.f32 %v755_v32, %v739_v30  ;;  %v3779_v30 = vcombine.low %v4360_v18, %v4359_v41  ;;  %v2525_v32 = vpop.f32.mrb[23].mxu0  ;;  %v4370_v18 = vld [vmem:[#allocation64_spill] sm:$0xff] }
 0x360   : > { %v761_v33 = vadd.f32 %v3454_v61, %v756_v13  ;;  %v4367_v13 = vld [vmem:[#allocation63_spill] sm:$0xff] }
 0x362   : > { %v3767_v4 = vadd.f32 %v761_v33, %v417_v51  ;;  %v4368_v51 = vld [vmem:[#allocation62_spill] sm:$0xff] }
 0x363   : > { %v3820_v33 = vcombine.low %v4368_v51, %v4367_v13  ;;  %v4373_v51 = vld [vmem:[#allocation69_spill] sm:$0xff] }
 0x364   : > { %v763_v16 = vpack.c.bf16 %v3767_v4, %v3767_v4 }
 0x365   : > { %2535 = vmatpush3.bf16.msra.mxu0 %v3820_v33 }
 0x366   : > { %2515 = vmatmul.mubr.msk.bf16.vlgmr.msra.gmra.mrb[16].mxu1 %vm259_vm2, %v763_v16  ;;  %2536 = vmatprep.subr.bf16.mxu0 %v4341_v7 }
 0x367   : > { %2527 = vmatpush3.bf16.msra.mxu1 %v3771_v54  ;;  %2530 = vmatprep.mubr.msk.bf16.mxu1 %vm3028_vm1, %v4341_v7 }
 0x368   : > { %2528 = vmatprep.subr.bf16.mxu1 %v4341_v7 }
 0x36b   : > { %2529 = vmatpush3.bf16.msra.mxu1 %v3779_v30 }
 0x36c   : > { %2542 = vmatprep.subr.bf16.mxu1 %v4341_v7 }
 0x36e   : > { %2531 = vmatmul.mubr.msk.bf16.vlgmr.msra.gmra.mrb[20].mxu1 %vm259_vm2, %v763_v16  ;;  %v4369_v16 = vld [vmem:[#allocation65_spill] sm:$0xff] }
 0x36f   : > { %2543 = vmatpush3.bf16.msra.mxu1 %v3788_v2  ;;  %2544 = vmatprep.mubr.msk.bf16.mxu1 %vm3028_vm1, %v4341_v7  ;;  %v3826_v19 = vcombine.low %v4370_v18, %v4369_v16 }
 0x370   : > { %2554 = vmatprep.subr.bf16.mxu1 %v4341_v7 }
 0x371   : > { %2537 = vmatpush3.bf16.msra.mxu0 %v3826_v19 }
 0x372   : > { %2548 = vmatprep.subr.bf16.mxu0 %v4341_v7 }
 0x376   : > { %2545 = vmatmul.mubr.msk.bf16.vlgmr.msra.gmra.mrb[24].mxu1 %vm1110_vm6, %v1109_v28 }
 0x377   : > { %2555 = vmatpush3.bf16.msra.mxu1 %v3544_v47  ;;  %2556 = vmatprep.mubr.msk.bf16.mxu1 %vm3028_vm1, %v4341_v7  ;;  %v4365_v47 = vld [vmem:[#allocation80_spill] sm:$0xff] }
 0x378   : > { %2568 = vmatprep.subr.bf16.mxu1 %v4341_v7 }
 0x37e   : > { %2557 = vmatmul.mubr.msk.bf16.vlgmr.msra.gmra.mrb[28].mxu1 %vm170_vm0, %v2326_v29 }
 0x37f   : > { %2569 = vmatpush3.bf16.msra.mxu1 %v4363_v21  ;;  %2572 = vmatprep.mubr.msk.bf16.mxu1 %vm3028_vm1, %v4341_v7 }
 0x380   : > { %2570 = vmatprep.subr.bf16.mxu1 %v4341_v7 }
 0x383   : > { %2571 = vmatpush3.bf16.msra.mxu1 %v4364_v27 }
 0x384   : > { %2584 = vmatprep.subr.bf16.mxu1 %v4341_v7 }
 0x386   : > { %2573 = vmatmul.mubr.msk.bf16.vlgmr.msra.gmra.mrb[32].mxu1 %vm259_vm2, %v3703_v11 }
 0x387   : > { %2585 = vmatpush3.bf16.msra.mxu1 %v4365_v47  ;;  %2588 = vmatprep.mubr.msk.bf16.mxu1 %vm3028_vm1, %v4341_v7  ;;  %v4371_v47 = vld [vmem:[#allocation68_spill] sm:$0xff] }
 0x388   : > { %2586 = vmatprep.subr.bf16.mxu1 %v4341_v7 }
 0x38b   : > { %2587 = vmatpush3.bf16.msra.mxu1 %v4366_v15  ;;  %v4372_v15 = vmov %v4371_v47 }
 0x38c   : > { %2600 = vmatprep.subr.bf16.mxu1 %v4341_v7 }
 0x439   : > { %v869_v28 = vpop.f32.mrb[16].mxu1 }
 0x43a   : > { %v870_v29 = vadd.f32 %v869_v28, %v814_v20  ;;  %v2516_v21 = vpop.f32.mrb[17].mxu1 }
 0x43b   : > { %v872_v27 = vpop.f32.mrb[18].mxu1 }
 0x43c   : > { %v879_v17 = vadd.f32 %v4371_v47, %v870_v29  ;;  %v2517_v23 = vpop.f32.mrb[19].mxu1 }
 0x43e   : > { %v2305_v25 = vmul.f32 -1.442695, %v879_v17 }
 0x440   : > { %2757 = vpow2.f32 %v2305_v25 }
 0x441   : > { %v988_v31 = vpop.f32.mrb[20].mxu1 }
 0x442   : > { %v989_v3 = vadd.f32 %v988_v31, %v936_v24  ;;  %v2532_v32 = vpop.f32.mrb[21].mxu1  ;;  %v1009_v31 = vsub.f32 %v3767_v4, %v3009_v55 }
 0x443   : > { %v991_v13 = vpop.f32.mrb[22].mxu1 }
 0x444   : > { %v998_v16 = vadd.f32 %v4373_v51, %v989_v3  ;;  %v2533_v18 = vpop.f32.mrb[23].mxu1 }
 0x446   : > { %v2313_v34 = vmul.f32 -1.442695, %v998_v16 }
 0x448   : > { %2759 = vpow2.f32 %v2313_v34 }
 0x449   : > { %v3832_v35 = vpop.f32.mrb[24].mxu1 }
 0x44a   : > { %v2758_v36 = vpop.eup %2757  ;;  %v2546_v20 = vpop.f32.mrb[25].mxu1 }
 0x44b   : > { %v883_v28 = vadd.f32 1.0, %v2758_v36  ;;  %v1155_v21 = vpop.f32.mrb[26].mxu1 }
 0x44c   : > { %v2547_v27 = vpop.f32.mrb[27].mxu1  ;;  %v4374_v21 = vld [vmem:[#allocation74_spill] sm:$0xff] }
 0x44d   : > { %2761 = vrcp.f32 %v883_v28 }
 0x451   : > { %v3834_v29 = vpop.f32.mrb[28].mxu1 }
 0x452   : > { %v2760_v47 = vpop.eup %2759  ;;  %v2558_v17 = vpop.f32.mrb[29].mxu1 }
 0x453   : > { %v1002_v24 = vadd.f32 1.0, %v2760_v47  ;;  %v1265_v23 = vpop.f32.mrb[30].mxu1 }
 0x454   : > { %v2559_v25 = vpop.f32.mrb[31].mxu1 }
 0x455   : > { %2763 = vrcp.f32 %v1002_v24 }
 0x457   : > { %v2762_v34 = vpop.eup %2761 }
 0x458   : > { %v1010_v3 = vmul.f32 %v2762_v34, %v1009_v31 }
 0x459   : > { %v3838_v32 = vpop.f32.mrb[32].mxu1 }
 0x45a   : > { %v2574_v13 = vpop.f32.mrb[33].mxu1  ;;  %v3846_v24 = vadd.f32 %v3009_v55, %v1010_v3 }
 0x45b   : > { %v1400_v36 = vpop.f32.mrb[34].mxu1 }
 0x45c   : > { %v2575_v16 = vpop.f32.mrb[35].mxu1 }
 0x45f   : > { %v2764_v18 = vpop.eup %2763 }
 0x460   : > { %v1006_v20 = vsub.f32 1.0, %v2764_v18  ;;  %v1005_v28 = vmul.f32 %v3001_v46, %v2764_v18  ;;  %v4375_v46 = vld [vmem:[#allocation66_spill] sm:$0xff] }
 0x461   : > { %v3859_v34 = vsel %vm1114_vm5, %v4375_v46, 0 }
 0x462   : > { %v1007_v27 = vmul.f32 %v4374_v21, %v1006_v20 }
 0x464   : > { %v3842_v47 = vadd.f32 %v1007_v27, %v1005_v28 }
 0x466   : > { %v1012_v17 = vmul.f32 1.8, %v3842_v47 }
 0x468   : > { %v1013_v4 = vadd.f32 0.1, %v1012_v17 }
 0x46a   : > { %v1014_v23 = vsub.f32 %v3846_v24, %v1013_v4 }
 0x46c   : > { %vm1015_vm7 = vcmp.gt.f32.partialorder %v1014_v23, 0.0 }
 0x46d   : > { %v3850_v25 = vsel %vm1015_vm7, 1.0, %v4341_v7 }
 0x46e   : > { %v1020_v31 = vpack.c.bf16 %v3850_v25, %v3850_v25 }
 0x470   : > { %2539 = vmatmul.mubr.msk.bf16.vlgmr.msra.gmra.mrb[24].mxu0 %vm259_vm2, %v1020_v31 }
 0x471   : > { %2550 = vmatprep.mubr.msk.bf16.mxu0 %vm3028_vm1, %v4341_v7  ;;  %2549 = vmatpush3.bf16.msra.mxu0 %v3859_v34 }
 0x472   : > { %2560 = vmatprep.subr.bf16.mxu0 %v4341_v7 }
 0x543   : > { %v1070_v55 = vpop.f32.mrb[24].mxu0 }
 0x544   : > { %v1077_v3 = vsel %vm1076_vm8, %v1070_v55, 0.0  ;;  %v2540_v13 = vpop.f32.mrb[25].mxu0 }
 0x545   : > { %v1078_v36 = vrot.slane %v1077_v3, 4  ;;  %v1073_v16 = vpop.f32.mrb[26].mxu0 }
 0x546   : > { %v2541_v18 = vpop.f32.mrb[27].mxu0 }
 0x547   : > { %v1079_v20 = vadd.f32 %v1078_v36, %v1077_v3  ;;  %v4376_v3 = vld [vmem:[#allocation71_spill] sm:$0xff] }
 0x549   : > { %v1080_v28 = vrot.slane %v1079_v20, 2 }
 0x54b   : > { %v1081_v21 = vadd.f32 %v1080_v28, %v1079_v20  ;;  %v4377_v28 = vld [vmem:[#allocation72_spill] sm:$0xff] }
 0x54d   : > { %v1082_v27 = vrot.slane %v1081_v21, 1 }
 0x54f   : > { %v1083_v17 = vadd.f32 %v1082_v27, %v1081_v21  ;;  %v4383_v27 = vld [vmem:[#allocation84_spill] sm:$0xff] }
 0x551   : > { %v1084_v4 = vmul.f32 0.25, %v1083_v17  ;;  %v1268_v17 = vsel %vm214_vm3, %v3834_v29, 0.0 }
 0x553   : > { %v1085_v23 = vsub.f32 %v1070_v55, %v1084_v4  ;;  %v1269_v4 = vrot.slane %v1268_v17, 4 }
 0x555   : > { %v1086_v31 = vmul.f32 %v1085_v23, %v1085_v23 }
 0x557   : > { %v1087_v46 = vsel %vm1076_vm8, %v1086_v31, 0.0 }
 0x558   : > { %v1088_v37 = vrot.slane %v1087_v46, 4 }
 0x55a   : > { %v1089_v38 = vadd.f32 %v1088_v37, %v1087_v46  ;;  %v4378_v37 = vld [vmem:[#allocation75_spill] sm:$0xff] }
 0x55c   : > { %v1090_v39 = vrot.slane %v1089_v38, 2 }
 0x55e   : > { %v1091_v41 = vadd.f32 %v1090_v39, %v1089_v38  ;;  %v4379_v38 = vld [vmem:[#allocation76_spill] sm:$0xff]  ;;  %v673_v39 = vsub.f32 1.0, %v3699_v8 }
 0x560   : > { %v1092_v42 = vrot.slane %v1091_v41, 1 }
 0x562   : > { %v1093_v43 = vadd.f32 %v1092_v42, %v1091_v41  ;;  %v4380_v41 = vld [vmem:[#allocation79_spill] sm:$0xff]  ;;  %v3887_v42 = vmul.f32 %v673_v39, %v3695_v9  ;;  %v1525_v9 = vpack.c.bf16 %v3691_v40, %v3691_v40  ;;  %v4384_v39 = vld [vmem:[#allocation70_spill] sm:$0xff] }
 0x564   : > { %v1094_v13 = vmul.f32 0.25, %v1093_v43  ;;  %v4381_v43 = vld [vmem:[#allocation81_spill] sm:$0xff] }
 0x566   : > { %v1095_v44 = vadd.f32 1e-05, %v1094_v13 }
 0x568   : > { %2765 = vrsqrt.f32 %v1095_v44  ;;  %v1431_v44 = vpack.c.bf16 %v3887_v42, %v3887_v42 }
 0x572   : > { %v2766_v16 = vpop.eup %2765 }
 0x573   : > { %v1097_v36 = vmul.f32 %v2766_v16, %v4376_v3 }
 0x575   : > { %v1101_v18 = vrot.slane %v1097_v36, %v3646_v14 }
 0x577   : > { %v1102_v20 = vmul.f32 %v1101_v18, %v1085_v23  ;;  %v1270_v23 = vadd.f32 %v1269_v4, %v1268_v17 }
 0x579   : > { %v3868_v55 = vadd.f32 %v4377_v28, %v1102_v20  ;;  %v1271_v31 = vrot.slane %v1270_v23, 2 }
 0x57b   : > { %v1108_v21 = vpack.c.bf16 %v3868_v55, %v3868_v55  ;;  %v1272_v46 = vadd.f32 %v1271_v31, %v1270_v23 }
 0x57d   : > { %2551 = vmatmul.mubr.msk.bf16.vlgmr.msra.gmra.mrb[28].mxu0 %vm1110_vm6, %v1108_v21  ;;  %v1273_v13 = vrot.slane %v1272_v46, 1 }
 0x57e   : > { %2561 = vmatpush3.bf16.msra.mxu0 %v4378_v37  ;;  %2564 = vmatprep.mubr.msk.bf16.mxu0 %vm3028_vm1, %v4341_v7 }
 0x57f   : > { %2562 = vmatprep.subr.bf16.mxu0 %v4341_v7  ;;  %v1274_v16 = vadd.f32 %v1273_v13, %v1272_v46 }
 0x581   : > { %v1275_v36 = vmul.f32 0.25, %v1274_v16 }
 0x582   : > { %2563 = vmatpush3.bf16.msra.mxu0 %v4379_v38 }
 0x583   : > { %2576 = vmatprep.subr.bf16.mxu0 %v4341_v7 }
 0x585   : > { %2565 = vmatmul.mubr.msk.bf16.vlgmr.msra.gmra.mrb[32].mxu0 %vm259_vm2, %v3703_v11  ;;  %v4382_v11 = vld [vmem:[#allocation83_spill] sm:$0xff] }
 0x586   : > { %2577 = vmatpush3.bf16.msra.mxu0 %v4380_v41  ;;  %2580 = vmatprep.mubr.msk.bf16.mxu0 %vm3028_vm1, %v4341_v7 }
 0x587   : > { %2578 = vmatprep.subr.bf16.mxu0 %v4341_v7 }
 0x58a   : > { %2579 = vmatpush3.bf16.msra.mxu0 %v4381_v43 }
 0x58b   : > { %2592 = vmatprep.subr.bf16.mxu0 %v4341_v7 }
 0x58d   : > { %2581 = vmatmul.mubr.msk.bf16.vlgmr.msra.gmra.mrb[36].mxu0 %vm259_vm2, %v1431_v44 }
 0x58e   : > { %2593 = vmatpush3.bf16.msra.mxu0 %v4382_v11  ;;  %2596 = vmatprep.mubr.msk.bf16.mxu0 %vm3028_vm1, %v4341_v7 }
 0x58f   : > { %2594 = vmatprep.subr.bf16.mxu0 %v4341_v7 }
 0x592   : > { %2595 = vmatpush3.bf16.msra.mxu0 %v4383_v27 }
 0x593   : > { %2608 = vmatprep.subr.bf16.mxu0 %v4341_v7 }
 0x595   : > { %2597 = vmatmul.mubr.msk.bf16.vlgmr.msra.gmra.mrb[40].mxu0 %vm259_vm2, %v1525_v9 }
 0x596   : > { %2609 = vmatpush3.bf16.msra.mxu0 %v3676_v12  ;;  %2612 = vmatprep.mubr.msk.bf16.mxu0 %vm3028_vm1, %v4341_v7  ;;  %v3912_v12 = vsub.f32 %v3834_v29, %v1275_v36 }
 0x597   : > { %2610 = vmatprep.subr.bf16.mxu0 %v4341_v7 }
 0x598   : > { %v1277_v18 = vmul.f32 %v3912_v12, %v3912_v12 }
 0x59a   : > { %2611 = vmatpush3.bf16.msra.mxu0 %v3681_v22  ;;  %v1278_v37 = vsel %vm214_vm3, %v1277_v18, 0.0 }
 0x59b   : > { %2624 = vmatprep.subr.bf16.mxu0 %v4341_v7  ;;  %v1279_v44 = vrot.slane %v1278_v37, 4 }
 0x59d   : > { %v1280_v9 = vadd.f32 %v1279_v44, %v1278_v37 }
 0x650   : > { %v1198_v20 = vpop.f32.mrb[28].mxu0 }
 0x651   : > { %v1199_v22 = vadd.f32 %v1198_v20, %v3832_v35  ;;  %v2552_v21 = vpop.f32.mrb[29].mxu0  ;;  %v1281_v35 = vrot.slane %v1280_v9, 2 }
 0x652   : > { %v1201_v38 = vpop.f32.mrb[30].mxu0 }
 0x653   : > { %v1208_v41 = vadd.f32 %v4384_v39, %v1199_v22  ;;  %v2553_v43 = vpop.f32.mrb[31].mxu0  ;;  %v1282_v20 = vadd.f32 %v1281_v35, %v1280_v9 }
 0x655   : > { %v2322_v11 = vmul.f32 -1.442695, %v1208_v41  ;;  %v1283_v44 = vrot.slane %v1282_v20, 1 }
 0x657   : > { %2767 = vpow2.f32 %v2322_v11 }
 0x658   : > { %v1329_v27 = vpop.f32.mrb[32].mxu0 }
 0x659   : > { %v1335_v29 = vsel %vm214_vm3, %v1329_v27, 0.0  ;;  %v2566_v17 = vpop.f32.mrb[33].mxu0 }
 0x65a   : > { %v1336_v4 = vrot.slane %v1335_v29, 4  ;;  %v1332_v23 = vpop.f32.mrb[34].mxu0 }
 0x65b   : > { %v2567_v31 = vpop.f32.mrb[35].mxu0 }
 0x65c   : > { %v1337_v46 = vadd.f32 %v1336_v4, %v1335_v29  ;;  %v1284_v29 = vadd.f32 %v1283_v44, %v1282_v20 }
 0x65e   : > { %v1338_v13 = vrot.slane %v1337_v46, 2  ;;  %v1285_v35 = vmul.f32 0.25, %v1284_v29 }
 0x660   : > { %v1339_v16 = vadd.f32 %v1338_v13, %v1337_v46  ;;  %v3920_v36 = vpop.f32.mrb[36].mxu0 }
 0x661   : > { %v2768_v18 = vpop.eup %2767  ;;  %v2582_v22 = vpop.f32.mrb[37].mxu0 }
 0x662   : > { %v1212_v21 = vadd.f32 1.0, %v2768_v18  ;;  %v1340_v38 = vrot.slane %v1339_v16, 1  ;;  %v1472_v41 = vpop.f32.mrb[38].mxu0 }
 0x663   : > { %v2583_v43 = vpop.f32.mrb[39].mxu0 }
 0x664   : > { %2769 = vrcp.f32 %v1212_v21  ;;  %v1341_v37 = vadd.f32 %v1340_v38, %v1339_v16  ;;  %v1286_v21 = vadd.f32 1e-05, %v1285_v35 }
 0x666   : > { %v1342_v11 = vmul.f32 0.25, %v1341_v37  ;;  %2771 = vrsqrt.f32 %v1286_v21 }
 0x668   : > { %v1343_v17 = vsub.f32 %v1329_v27, %v1342_v11  ;;  %v3922_v23 = vpop.f32.mrb[40].mxu0 }
 0x669   : > { %v2598_v4 = vpop.f32.mrb[41].mxu0 }
 0x66a   : > { %v1344_v31 = vmul.f32 %v1343_v17, %v1343_v17  ;;  %v1566_v46 = vpop.f32.mrb[42].mxu0 }
 0x66b   : > { %v2599_v13 = vpop.f32.mrb[43].mxu0 }
 0x66c   : > { %v1345_v9 = vsel %vm214_vm3, %v1344_v31, 0.0 }
 0x66d   : > { %v1346_v18 = vrot.slane %v1345_v9, 4 }
 0x66e   : > { %v2770_v22 = vpop.eup %2769 }
 0x66f   : > { %v1215_v41 = vsub.f32 1.0, %v2770_v22  ;;  %v1347_v43 = vadd.f32 %v1346_v18, %v1345_v9  ;;  %v1217_v27 = vmul.f32 %v2770_v22, %v3868_v55 }
 0x670   : > { %v2772_v55 = vpop.eup %2771 }
 0x671   : > { %v1216_v16 = vmul.f32 %v4362_v26, %v1215_v41  ;;  %v1348_v38 = vrot.slane %v1347_v43, 2  ;;  %v1288_v4 = vmul.f32 %v2772_v55, %v3429_v56 }
 0x673   : > { %v1349_v20 = vadd.f32 %v1348_v38, %v1347_v43  ;;  %v3933_v37 = vadd.f32 %v1217_v27, %v1216_v16  ;;  %v1292_v31 = vrot.slane %v1288_v4, %v3646_v14 }
 0x675   : > { %v1350_v44 = vrot.slane %v1349_v20, 1  ;;  %1221 = vst.msk [vmem:[%s3931_s9] sm:$0xf] %vm1076_vm8, %v3933_v37  ;;  %v1293_v9 = vmul.f32 %v1292_v31, %v3912_v12  ;;  %v1018_v12 = vsub.f32 1.0, %v3850_v25 }
 0x677   : > { %v1351_v11 = vadd.f32 %v1350_v44, %v1349_v20  ;;  %v1294_v22 = vadd.f32 %v3434_v57, %v1293_v9 }
 0x679   : > { %v1352_v29 = vmul.f32 0.25, %v1351_v11 }
 0x67b   : > { %v1353_v26 = vadd.f32 1e-05, %v1352_v29 }
 0x67d   : > { %2773 = vrsqrt.f32 %v1353_v26 }
 0x687   : > { %v2774_v46 = vpop.eup %2773 }
 0x688   : > { %v1355_v13 = vmul.f32 %v2774_v46, %v3439_v58 }
 0x68a   : > { %v1359_v35 = vrot.slane %v1355_v13, %v3646_v14 }
 0x68c   : > { %v1360_v18 = vmul.f32 %v1359_v35, %v1343_v17 }
 0x68e   : > { %v1361_v41 = vadd.f32 %v3444_v59, %v1360_v18 }
 0x690   : > { %v3945_v43 = vadd.f32 %v1361_v41, %v1294_v22 }
 0x692   : > { %v1430_v21 = vpack.c.bf16 %v3945_v43, %v3945_v43  ;;  %v1620_v41 = vsub.f32 %v3945_v43, %v3887_v42 }
 0x694   : > { %2589 = vmatmul.mubr.msk.bf16.vlgmr.msra.gmra.mrb[36].mxu1 %vm259_vm2, %v1430_v21 }
 0x695   : > { %2601 = vmatpush3.bf16.msra.mxu1 %v3656_v5  ;;  %2604 = vmatprep.mubr.msk.bf16.mxu1 %vm3028_vm1, %v4341_v7  ;;  %v3963_v5 = vmul.f32 %v1018_v12, %v3846_v24 }
 0x696   : > { %2602 = vmatprep.subr.bf16.mxu1 %v4341_v7 }
 0x699   : > { %2603 = vmatpush3.bf16.msra.mxu1 %v3662_v1  ;;  %v1704_v1 = vpack.c.bf16 %v3963_v5, %v3963_v5 }
 0x69a   : > { %2616 = vmatprep.subr.bf16.mxu1 %v4341_v7 }
 0x69c   : > { %2605 = vmatmul.mubr.msk.bf16.vlgmr.msra.gmra.mrb[40].mxu1 %vm259_vm2, %v1430_v21 }
 0x69d   : > { %2617 = vmatpush3.bf16.msra.mxu1 %v3711_v48  ;;  %2620 = vmatprep.mubr.msk.bf16.mxu1 %vm3028_vm1, %v4341_v7  ;;  %v1798_v48 = vpack.c.bf16 %v3842_v47, %v3842_v47 }
 0x69e   : > { %2618 = vmatprep.subr.bf16.mxu1 %v4341_v7 }
 0x6a1   : > { %2619 = vmatpush3.bf16.msra.mxu1 %v3721_v50 }
 0x6a2   : > { %2632 = vmatprep.subr.bf16.mxu1 %v4341_v7 }
 0x6a4   : > { %2621 = vmatmul.mubr.msk.bf16.vlgmr.msra.gmra.mrb[44].mxu1 %vm259_vm2, %v1704_v1 }
 0x6a5   : > { %2633 = vmatpush3.bf16.msra.mxu1 %v3735_v10  ;;  %2636 = vmatprep.mubr.msk.bf16.mxu1 %vm3028_vm1, %v4341_v7 }
 0x6a6   : > { %2634 = vmatprep.subr.bf16.mxu1 %v4341_v7 }
 0x6a9   : > { %2635 = vmatpush3.bf16.msra.mxu1 %v3746_v6 }
 0x6aa   : > { %2648 = vmatprep.subr.bf16.mxu1 %v4341_v7 }
 0x6ac   : > { %2637 = vmatmul.mubr.msk.bf16.vlgmr.msra.gmra.mrb[48].mxu1 %vm259_vm2, %v1798_v48 }
 0x6ad   : > { %2649 = vmatpush3.bf16.msra.mxu1 %v3820_v33  ;;  %2652 = vmatprep.mubr.msk.bf16.mxu1 %vm3028_vm1, %v4341_v7 }
 0x6ae   : > { %2650 = vmatprep.subr.bf16.mxu1 %v4341_v7 }
 0x6b1   : > { %2651 = vmatpush3.bf16.msra.mxu1 %v3826_v19 }
 0x6b2   : > { %2662 = vmatprep.subr.bf16.mxu1 %v4341_v7 }
 0x767   : > { %v1512_v50 = vpop.f32.mrb[36].mxu1 }
 0x768   : > { %v1513_v10 = vadd.f32 %v1512_v50, %v3920_v36  ;;  %v2590_v6 = vpop.f32.mrb[37].mxu1 }
 0x769   : > { %v1515_v24 = vpop.f32.mrb[38].mxu1 }
 0x76a   : > { %v1518_v17 = vadd.f32 %v3409_v52, %v1513_v10  ;;  %v2591_v16 = vpop.f32.mrb[39].mxu1 }
 0x76c   : > { %v2332_v27 = vmul.f32 -1.442695, %v1518_v17 }
 0x76e   : > { %2775 = vpow2.f32 %v2332_v27 }
 0x76f   : > { %v1603_v33 = vpop.f32.mrb[40].mxu1 }
 0x770   : > { %v1604_v38 = vadd.f32 %v1603_v33, %v3922_v23  ;;  %v2606_v20 = vpop.f32.mrb[41].mxu1 }
 0x771   : > { %v1606_v44 = vpop.f32.mrb[42].mxu1 }
 0x772   : > { %v1609_v11 = vadd.f32 %v3414_v53, %v1604_v38  ;;  %v2607_v19 = vpop.f32.mrb[43].mxu1 }
 0x774   : > { %v2335_v29 = vmul.f32 -1.442695, %v1609_v11 }
 0x776   : > { %2777 = vpow2.f32 %v2335_v29 }
 0x777   : > { %v3989_v26 = vpop.f32.mrb[44].mxu1 }
 0x778   : > { %v2776_v36 = vpop.eup %2775  ;;  %v2622_v55 = vpop.f32.mrb[45].mxu1 }
 0x779   : > { %v1522_v4 = vadd.f32 1.0, %v2776_v36  ;;  %v1745_v31 = vpop.f32.mrb[46].mxu1 }
 0x77a   : > { %v2623_v46 = vpop.f32.mrb[47].mxu1 }
 0x77b   : > { %2779 = vrcp.f32 %v1522_v4 }
 0x77f   : > { %v3991_v13 = vpop.f32.mrb[48].mxu1 }
 0x780   : > { %v2778_v9 = vpop.eup %2777  ;;  %v2638_v35 = vpop.f32.mrb[49].mxu1 }
 0x781   : > { %v1613_v23 = vadd.f32 1.0, %v2778_v9  ;;  %v1839_v18 = vpop.f32.mrb[50].mxu1 }
 0x782   : > { %v2639_v22 = vpop.f32.mrb[51].mxu1 }
 0x783   : > { %2781 = vrcp.f32 %v1613_v23 }
 0x785   : > { %v2780_v21 = vpop.eup %2779 }
 0x786   : > { %v1621_v12 = vmul.f32 %v2780_v21, %v1620_v41 }
 0x788   : > { %v1622_v17 = vadd.f32 %v1621_v12, %v3887_v42 }
 0x78d   : > { %v2782_v1 = vpop.eup %2781 }
 0x78e   : > { %v1617_v48 = vsub.f32 1.0, %v2782_v1  ;;  %v1616_v50 = vmul.f32 %v2782_v1, %v3691_v40 }
 0x790   : > { %v1618_v10 = vmul.f32 %v3699_v8, %v1617_v48  ;;  %v1403_v8 = vsel %vm214_vm3, %v3838_v32, 0.0 }
 0x791   : > { %v1404_v42 = vrot.slane %v1403_v8, 4 }
 0x792   : > { %v3997_v50 = vadd.f32 %v1618_v10, %v1616_v50  }
 0x793   : > { %v1405_v20 = vadd.f32 %v1404_v42, %v1403_v8 }
 0x794   : > { %v4385_v6 = vmov %v3997_v50 }
 0x795   : > { %v1623_v24 = vmul.f32 1.8, %v4385_v6  ;;  %v1406_v44 = vrot.slane %v1405_v20, 2  ;;  %2080 = vst.msk [vmem:[#allocation6] sm:$0xf] (%p147_p0), %vm214_vm3, %v4385_v6 }
 0x797   : > { %v1624_v16 = vadd.f32 0.1, %v1623_v24  ;;  %v1407_v11 = vadd.f32 %v1406_v44, %v1405_v20 }
 0x799   : > { %v1625_v27 = vsub.f32 %v1622_v17, %v1624_v16  ;;  %v1408_v19 = vrot.slane %v1407_v11, 1 }
 0x79b   : > { %vm1626_vm9 = vcmp.gt.f32.partialorder %v1625_v27, 0.0  ;;  %v1409_v29 = vadd.f32 %v1408_v19, %v1407_v11 }
 0x79c   : > { %v4002_v33 = vsel %vm1626_vm9, 1.0, %v4341_v7  }
 0x79d   : > { %v1629_v43 = vsub.f32 1.0, %v4002_v33  ;;  %v1631_v38 = vpack.c.bf16 %v4002_v33, %v4002_v33  ;;  %v1410_v36 = vmul.f32 0.25, %v1409_v29  ;;  %2079 = vst.msk [vmem:[#allocation4] sm:$0xf] (%p147_p0), %vm214_vm3, %v4002_v33 }
 0x79f   : > { %v4007_v48 = vmul.f32 %v1629_v43, %v1622_v17   ;;  %2613 = vmatmul.mubr.msk.bf16.vlgmr.msra.gmra.mrb[44].mxu0 %vm259_vm2, %v1631_v38 }
 0x7a0   : > { %2625 = vmatpush3.bf16.msra.mxu0 %v3716_v49  ;;  %2628 = vmatprep.mubr.msk.bf16.mxu0 %vm3028_vm1, %v4341_v7  ;;  %v1411_v49 = vsub.f32 %v3838_v32, %v1410_v36 }
 0x7a1   : > { %v4386_v40 = vmov %v4007_v48  ;;  %2626 = vmatprep.subr.bf16.mxu0 %v4341_v7 }
 0x7a2   : > { %v1412_v55 = vmul.f32 %v1411_v49, %v1411_v49  ;;  %2078 = vst.msk [vmem:[#allocation2] sm:$0xf] (%p147_p0), %vm214_vm3, %v4386_v40 }
 0x7a4   : > { %2627 = vmatpush3.bf16.msra.mxu0 %v3728_v0  ;;  %v1413_v4 = vsel %vm214_vm3, %v1412_v55, 0.0 }
 0x7a5   : > { %2640 = vmatprep.subr.bf16.mxu0 %v4341_v7  ;;  %v1414_v31 = vrot.slane %v1413_v4, 4 }
 0x7a7   : > { %v1415_v0 = vadd.f32 %v1414_v31, %v1413_v4 }
 0x7a9   : > { %v1416_v21 = vrot.slane %v1415_v0, 2 }
 0x7ab   : > { %v1417_v48 = vadd.f32 %v1416_v21, %v1415_v0 }
 0x7ad   : > { %v1418_v32 = vrot.slane %v1417_v48, 1 }
 0x7af   : > { %v1419_v16 = vadd.f32 %v1418_v32, %v1417_v48 }
 0x7b1   : > { %v1420_v38 = vmul.f32 0.25, %v1419_v16 }
 0x7b3   : > { %v1421_v20 = vadd.f32 1e-05, %v1420_v38 }
 0x7b5   : > { %2783 = vrsqrt.f32 %v1421_v20 }
 0x7bf   : > { %v2784_v4 = vpop.eup %2783 }
 0x7c0   : > { %v1423_v31 = vmul.f32 %v2784_v4, %v3459_v62 }
 0x872   : > { %v1669_v46 = vpop.f32.mrb[44].mxu0 }
 0x873   : > { %v1675_v9 = vsel %vm214_vm3, %v1669_v46, 0.0  ;;  %v2614_v35 = vpop.f32.mrb[45].mxu0 }
 0x874   : > { %v1676_v23 = vrot.slane %v1675_v9, 4  ;;  %v1672_v18 = vpop.f32.mrb[46].mxu0 }
 0x875   : > { %v2615_v22 = vpop.f32.mrb[47].mxu0 }
 0x876   : > { %v1677_v41 = vadd.f32 %v1676_v23, %v1675_v9 }
 0x878   : > { %v1678_v12 = vrot.slane %v1677_v41, 2 }
 0x87a   : > { %v1679_v1 = vadd.f32 %v1678_v12, %v1677_v41 }
 0x87c   : > { %v1680_v50 = vrot.slane %v1679_v1, 1 }
 0x87e   : > { %v1681_v10 = vadd.f32 %v1680_v50, %v1679_v1 }
 0x880   : > { %v1682_v24 = vmul.f32 0.25, %v1681_v10 }
 0x882   : > { %v1683_v17 = vsub.f32 %v1669_v46, %v1682_v24  ;;  %v1427_v46 = vrot.slane %v1423_v31, %v3646_v14 }
 0x884   : > { %v1684_v27 = vmul.f32 %v1683_v17, %v1683_v17  ;;  %v1428_v35 = vmul.f32 %v1427_v46, %v1411_v49  ;;  %v1976_v49 = vpack.c.bf16 %v3933_v37, %v3933_v37 }
 0x886   : > { %v1685_v43 = vsel %vm214_vm3, %v1684_v27, 0.0  ;;  %v1429_v22 = vadd.f32 %v3464_v63, %v1428_v35 }
 0x887   : > { %v1686_v8 = vrot.slane %v1685_v43, 4 }
 0x889   : > { %v1687_v42 = vadd.f32 %v1686_v8, %v1685_v43 }
 0x88b   : > { %v1688_v44 = vrot.slane %v1687_v42, 2 }
 0x88d   : > { %v1689_v11 = vadd.f32 %v1688_v44, %v1687_v42 }
 0x88f   : > { %v1690_v19 = vrot.slane %v1689_v11, 1 }
 0x891   : > { %v1691_v29 = vadd.f32 %v1690_v19, %v1689_v11 }
 0x893   : > { %v1692_v36 = vmul.f32 0.25, %v1691_v29 }
 0x895   : > { %v1693_v55 = vadd.f32 1e-05, %v1692_v36 }
 0x897   : > { %2785 = vrsqrt.f32 %v1693_v55 }
 0x8a1   : > { %v2786_v0 = vpop.eup %2785 }
 0x8a2   : > { %v1695_v9 = vmul.f32 %v2786_v0, %v3449_v60 }
 0x8a4   : > { %v1699_v23 = vrot.slane %v1695_v9, %v3646_v14 }
 0x8a6   : > { %v1700_v18 = vmul.f32 %v1699_v23, %v1683_v17 }
 0x8a8   : > { %v1701_v41 = vadd.f32 %v3454_v61, %v1700_v18 }
 0x8aa   : > { %v1702_v21 = vadd.f32 %v1701_v41, %v1429_v22 }
 0x8ac   : > { %v1703_v12 = vpack.c.bf16 %v1702_v21, %v1702_v21  ;;  %v1893_v36 = vsub.f32 %v1702_v21, %v3963_v5 }
 0x8ae   : > { %2629 = vmatmul.mubr.msk.bf16.vlgmr.msra.gmra.mrb[48].mxu0 %vm259_vm2, %v1703_v12 }
 0x8af   : > { %2641 = vmatpush3.bf16.msra.mxu0 %v3771_v54  ;;  %2644 = vmatprep.mubr.msk.bf16.mxu0 %vm3028_vm1, %v4341_v7 }
 0x8b0   : > { %2642 = vmatprep.subr.bf16.mxu0 %v4341_v7 }
 0x8b3   : > { %2643 = vmatpush3.bf16.msra.mxu0 %v3779_v30 }
 0x8b4   : > { %2656 = vmatprep.subr.bf16.mxu0 %v4341_v7 }
 0x8b6   : > { %2645 = vmatmul.mubr.msk.bf16.vlgmr.msra.gmra.mrb[52].mxu0 %vm259_vm2, %v1703_v12 }
 0x8b7   : > { %2657 = vmatpush3.bf16.msra.mxu0 %v3788_v2  ;;  %2658 = vmatprep.mubr.msk.bf16.mxu0 %vm3028_vm1, %v4341_v7 }
 0x8be   : > { %2659 = vmatmul.mubr.msk.bf16.vlgmr.msra.gmra.mrb[56].mxu0 %vm1110_vm6, %v1976_v49 }
 0x981   : > { %v1785_v54 = vpop.f32.mrb[48].mxu0 }
 0x982   : > { %v1786_v1 = vadd.f32 %v1785_v54, %v3989_v26  ;;  %v2630_v48 = vpop.f32.mrb[49].mxu0 }
 0x983   : > { %v1788_v50 = vpop.f32.mrb[50].mxu0 }
 0x984   : > { %v1791_v30 = vadd.f32 %v4372_v15, %v1786_v1  ;;  %v2631_v10 = vpop.f32.mrb[51].mxu0 }
 0x986   : > { %v2340_v32 = vmul.f32 -1.442695, %v1791_v30 }
 0x988   : > { %2787 = vpow2.f32 %v2340_v32 }
 0x989   : > { %v1876_v24 = vpop.f32.mrb[52].mxu0 }
 0x98a   : > { %v1877_v2 = vadd.f32 %v1876_v24, %v3991_v13  ;;  %v2646_v17 = vpop.f32.mrb[53].mxu0 }
 0x98b   : > { %v1879_v16 = vpop.f32.mrb[54].mxu0 }
 0x98c   : > { %v1882_v27 = vadd.f32 %v4373_v51, %v1877_v2  ;;  %v2647_v43 = vpop.f32.mrb[55].mxu0 }
 0x98e   : > { %v2343_v38 = vmul.f32 -1.442695, %v1882_v27 }
 0x990   : > { %2789 = vpow2.f32 %v2343_v38 }
 0x991   : > { %v2014_v8 = vpop.f32.mrb[56].mxu0 }
 0x992   : > { %v2788_v42 = vpop.eup %2787  ;;  %v2660_v26 = vpop.f32.mrb[57].mxu0 }
 0x993   : > { %v1795_v20 = vadd.f32 1.0, %v2788_v42  ;;  %v2017_v44 = vpop.f32.mrb[58].mxu0 }
 0x994   : > { %v2661_v11 = vpop.f32.mrb[59].mxu0 }
 0x995   : > { %2791 = vrcp.f32 %v1795_v20 }
 0x99a   : > { %v2790_v19 = vpop.eup %2789 }
 0x99b   : > { %v1886_v29 = vadd.f32 1.0, %v2790_v19 }
 0x99d   : > { %2793 = vrcp.f32 %v1886_v29 }
 0x99f   : > { %v2792_v13 = vpop.eup %2791 }
 0x9a0   : > { %v1894_v55 = vmul.f32 %v2792_v13, %v1893_v36 }
 0x9a2   : > { %v1895_v23 = vadd.f32 %v1894_v55, %v3963_v5 }
 0x9a7   : > { %v2794_v4 = vpop.eup %2793 }
 0x9a8   : > { %v1890_v31 = vsub.f32 1.0, %v2794_v4  ;;  %v1889_v46 = vmul.f32 %v2794_v4, %v3842_v47 }
 0x9aa   : > { %v1891_v0 = vmul.f32 %v3850_v25, %v1890_v31 }
 0x9ac   : > { %v4049_v46 = vadd.f32 %v1891_v0, %v1889_v46  }
 0x9ae   : > { %v4387_v9 = vmov %v4049_v46 }
 0x9af   : > { %v1896_v35 = vmul.f32 1.8, %v4387_v9  ;;  %2083 = vst.msk [vmem:[#allocation10] sm:$0xf] (%p147_p0), %vm214_vm3, %v4387_v9 }
 0x9b1   : > { %v1897_v18 = vadd.f32 0.1, %v1896_v35 }
 0x9b3   : > { %v1898_v22 = vsub.f32 %v1895_v23, %v1897_v18 }
 0x9b5   : > { %vm1899_vm10 = vcmp.gt.f32.partialorder %v1898_v22, 0.0 }
 0x9b6   : > { %v4054_v54 = vsel %vm1899_vm10, 1.0, %v4341_v7  }
 0x9b7   : > { %v4388_v41 = vmov %v4054_v54 }
 0x9b8   : > { %v1902_v21 = vsub.f32 1.0, %v4388_v41  ;;  %v1904_v12 = vpack.c.bf16 %v4388_v41, %v4388_v41  ;;  %2082 = vst.msk [vmem:[#allocation9] sm:$0xf] (%p147_p0), %vm214_vm3, %v4388_v41 }
 0x9ba   : > { %v4059_v55 = vmul.f32 %v1902_v21, %v1895_v23   ;;  %2653 = vmatmul.mubr.msk.bf16.vlgmr.msra.gmra.mrb[52].mxu1 %vm259_vm2, %v1904_v12 }
 0x9bb   : > { %2663 = vmatpush3.bf16.msra.mxu1 %v3859_v34  ;;  %2664 = vmatprep.mubr.msk.bf16.mxu1 %vm3028_vm1, %v4341_v7 }
 0x9bc   : > { %v4389_v1 = vmov %v4059_v55 }
 0x9bd   :  { %2081 = vst.msk [vmem:[#allocation7] sm:$0xf] (%p147_p0), %vm214_vm3, %v4389_v1 }
 0xa8d   : > { %v1942_v47 = vpop.f32.mrb[52].mxu1 }
 0xa8e   : > { %v1948_v25 = vsel %vm1076_vm8, %v1942_v47, 0.0  ;;  %v2654_v5 = vpop.f32.mrb[53].mxu1 }
 0xa8f   : > { %v1949_v49 = vrot.slane %v1948_v25, 4  ;;  %v1945_v54 = vpop.f32.mrb[54].mxu1 }
 0xa90   : > { %v2655_v48 = vpop.f32.mrb[55].mxu1  ;;  %v4392_v54 = vmov %v4388_v41 }
 0xa91   : > { %v1950_v50 = vadd.f32 %v1949_v49, %v1948_v25  ;;  %v4395_v49 = vmov %v4002_v33  ;;  %v4396_v48 = vmov %v4386_v40 }
 0xa93   : > { %v1951_v30 = vrot.slane %v1950_v50, 2 }
 0xa95   : > { %v1952_v10 = vadd.f32 %v1951_v30, %v1950_v50  ;;  %v4394_v50 = vmov %v4385_v6 }
 0xa97   : > { %v1953_v32 = vrot.slane %v1952_v10, 1 }
 0xa99   : > { %v1954_v24 = vadd.f32 %v1953_v32, %v1952_v10 }
 0xa9b   : > { %v1955_v2 = vmul.f32 0.25, %v1954_v24 }
 0xa9d   : > { %v1956_v17 = vsub.f32 %v1942_v47, %v1955_v2 }
 0xa9f   : > { %v1957_v16 = vmul.f32 %v1956_v17, %v1956_v17 }
 0xaa1   : > { %v1958_v34 = vsel %vm1076_vm8, %v1957_v16, 0.0 }
 0xaa2   : > { %v1959_v27 = vrot.slane %v1958_v34, 4 }
 0xaa4   : > { %v1960_v43 = vadd.f32 %v1959_v27, %v1958_v34 }
 0xaa6   : > { %v1961_v7 = vrot.slane %v1960_v43, 2 }
 0xaa8   : > { %v1962_v38 = vadd.f32 %v1961_v7, %v1960_v43 }
 0xaaa   : > { %v1963_v42 = vrot.slane %v1962_v38, 1 }
 0xaac   : > { %v1964_v26 = vadd.f32 %v1963_v42, %v1962_v38 }
 0xaae   : > { %v1965_v20 = vmul.f32 0.25, %v1964_v26 }
 0xab0   : > { %v1966_v44 = vadd.f32 1e-05, %v1965_v20 }
 0xab2   : > { %2795 = vrsqrt.f32 %v1966_v44 }
 0xabc   : > { %v2796_v11 = vpop.eup %2795 }
 0xabd   : > { %v1968_v19 = vmul.f32 %v2796_v11, %v4376_v3 }
 0xabf   : > { %v1972_v29 = vrot.slane %v1968_v19, %v3646_v14 }
 0xac1   : > { %v1973_v36 = vmul.f32 %v1972_v29, %v1956_v17 }
 0xac3   : > { %v1974_v13 = vadd.f32 %v4377_v28, %v1973_v36 }
 0xac5   : > { %v1975_v55 = vpack.c.bf16 %v1974_v13, %v1974_v13 }
 0xac7   : > { %2665 = vmatmul.mubr.msk.bf16.vlgmr.msra.gmra.mrb[56].mxu1 %vm1110_vm6, %v1975_v55  ;;  %v4393_v55 = vmov %v4389_v1 }
 0xb9a   : > { %v2057_v4 = vpop.f32.mrb[56].mxu1 }
 0xb9b   : > { %v2058_v31 = vadd.f32 %v2057_v4, %v2014_v8  ;;  %v2666_v46 = vpop.f32.mrb[57].mxu1 }
 0xb9c   : > { %v2060_v0 = vpop.f32.mrb[58].mxu1  ;;  %v4391_v46 = vmov %v4387_v9 }
 0xb9d   : > { %v2063_v35 = vadd.f32 %v4384_v39, %v2058_v31  ;;  %v2667_v23 = vpop.f32.mrb[59].mxu1 }
 0xb9f   : > { %v2348_v18 = vmul.f32 -1.442695, %v2063_v35 }
 0xba1   : > { %2797 = vpow2.f32 %v2348_v18 }
 0xbab   : > { %v2798_v22 = vpop.eup %2797 }
 0xbac   : > { %v2067_v21 = vadd.f32 1.0, %v2798_v22 }
 0xbae   : > { %2799 = vrcp.f32 %v2067_v21 }
 0xbb8   : > { %v2800_v14 = vpop.eup %2799 }
 0xbb9   : > { %v2070_v12 = vsub.f32 1.0, %v2800_v14  ;;  %v2072_v25 = vmul.f32 %v2800_v14, %v1974_v13  ;;  %149 = sbr.rel (!%p147_p0) target bundleno = 51 (0x33), region = 154 }
 0xbbb   : > { %v2071_v47 = vmul.f32 %v2070_v12, %v3933_v37 }
 0xbbd   : > { %v2073_v5 = vadd.f32 %v2072_v25, %v2071_v47  }
 0xbbf   : > { %2351 = vst.msk [vmem:[%s3931_s9 + $0x4] sm:$0xf] %vm1076_vm8, %v2073_v5  ;;  %v4390_v47 = vmov %v2073_v5  ;;  %2085 = vst.msk [vmem:[#allocation12] sm:$0xf] (%p147_p0), %vm1076_vm8, %v2073_v5 }
 0xbc0   :  { %2812 = shalt.err (!%p2809_p5)
}
 0xbc1   :  { %s2813_s5 = scalar_lea.hbm %s4211_s16, 64 }
 0xbc2   :  { %p2814_p6 = scmp.ne.s32.totalorder %s4211_s16, %s2813_s5  ;;  %p2817_p7 = scmp.lt.u32.totalorder %s2813_s5, %s4211_s16 }
 0xbc4   :  { %p2819_p8 = pnand %p2817_p7, %p2814_p6 }
 0xbc6   :  { %2822 = shalt.err (!%p2819_p8)
}
 0xbc7   :  { %2107 = dma.vmem_to_hbm [thread:$0]  %s2105_s3, 64, %s4211_s16, [#allocation5]  }
 0xbc8   :  { %s2823_s1 = scalar_lea.vmem %s2125_s29, 64  ;;  %p2828_p10 = scmp.lt.s32.totalorder %s2125_s29, %s2125_s29 }
 0xbc9   :  { %p2824_p9 = scmp.ne.s32.totalorder %s2125_s29, %s2823_s1  ;;  %p2829_p11 = scmp.lt.s32.totalorder %s2823_s1, %s2823_s1 }
 0xbcb   :  { %p2830_p12 = por %p2829_p11, %p2828_p10 }
 0xbcd   :  { %p2831_p13 = pnand %p2830_p12, %p2824_p9 }
 0xbcf   :  { %2834 = shalt.err (!%p2831_p13)
}
 0xbd0   :  { %s2835_s24 = scalar_lea.hbm %s4213_s18, 64 }
 0xbd1   :  { %p2836_p0 = scmp.ne.s32.totalorder %s4213_s18, %s2835_s24  ;;  %p2839_p1 = scmp.lt.u32.totalorder %s2835_s24, %s4213_s18 }
 0xbd3   :  { %p2841_p2 = pnand %p2839_p1, %p2836_p0 }
 0xbd5   :  { %2844 = shalt.err (!%p2841_p2)
}
 0xbd6   :  { %2127 = dma.vmem_to_hbm [thread:$0]  %s2125_s29, 64, %s4213_s18, [#allocation8]  }
 0xbd7   :  { %s3031_s9 = smov [#allocation10]   ;;  %s3032_s3 = smov [#allocation2]  }
 0xbd8   :  { %s2144_s14 = sshll.u32 %s3031_s9, 4  ;;  %s2094_s28 = sshll.u32 %s3032_s3, 4  ;;  %s2145_s14 = int_to_ptr.vmem [resolvable:$true] %s2144_s14  ;;  %s2095_s28 = int_to_ptr.vmem [resolvable:$true] %s2094_s28 }
 0xbd9   :  { %s2845_s0 = scalar_lea.vmem %s2145_s14, 64  ;;  %p2850_p4 = scmp.lt.s32.totalorder %s2145_s14, %s2145_s14 }
 0xbda   :  { %p2846_p3 = scmp.ne.s32.totalorder %s2145_s14, %s2845_s0  ;;  %p2851_p5 = scmp.lt.s32.totalorder %s2845_s0, %s2845_s0 }
 0xbdc   :  { %p2852_p6 = por %p2851_p5, %p2850_p4 }
 0xbde   :  { %p2853_p7 = pnand %p2852_p6, %p2846_p3 }
 0xbe0   :  { %2856 = shalt.err (!%p2853_p7)
}
 0xbe1   :  { %s2857_s5 = scalar_lea.hbm %s4215_s20, 64 }
 0xbe2   :  { %p2858_p8 = scmp.ne.s32.totalorder %s4215_s20, %s2857_s5  ;;  %p2861_p9 = scmp.lt.u32.totalorder %s2857_s5, %s4215_s20 }
 0xbe4   :  { %p2863_p10 = pnand %p2861_p9, %p2858_p8 }
 0xbe6   :  { %2866 = shalt.err (!%p2863_p10)
}
 0xbe7   :  { %2147 = dma.vmem_to_hbm [thread:$0]  %s2145_s14, 64, %s4215_s20, [#allocation11]  }
 0xbe8   :  { %s2867_s23 = scalar_lea.vmem %s2095_s28, 64  ;;  %p2872_p12 = scmp.lt.s32.totalorder %s2095_s28, %s2095_s28 }
 0xbe9   :  { %p2868_p11 = scmp.ne.s32.totalorder %s2095_s28, %s2867_s23  ;;  %p2873_p13 = scmp.lt.s32.totalorder %s2867_s23, %s2867_s23 }
 0xbeb   :  { %p2874_p0 = por %p2873_p13, %p2872_p12 }
 0xbed   :  { %p2875_p1 = pnand %p2874_p0, %p2868_p11 }
 0xbef   :  { %2878 = shalt.err (!%p2875_p1)
}
 0xbf0   :  { %s2879_s6 = scalar_lea.hbm %s4210_s15, 64 }
 0xbf1   :  { %p2880_p2 = scmp.ne.s32.totalorder %s4210_s15, %s2879_s6  ;;  %p2883_p3 = scmp.lt.u32.totalorder %s2879_s6, %s4210_s15 }
 0xbf3   :  { %p2885_p4 = pnand %p2883_p3, %p2880_p2 }
 0xbf5   :  { %2888 = shalt.err (!%p2885_p4)
}
 0xbf6   :  { %2097 = dma.vmem_to_hbm [thread:$0]  %s2095_s28, 64, %s4210_s15, [#allocation3]  }
 0xbf7   :  { %s3033_s12 = smov [#allocation6]   ;;  %s3034_s27 = smov [#allocation9]  }
 0xbf8   :  { %s2114_s16 = sshll.u32 %s3033_s12, 4  ;;  %s2134_s9 = sshll.u32 %s3034_s27, 4  ;;  %s2115_s16 = int_to_ptr.vmem [resolvable:$true] %s2114_s16  ;;  %s2135_s9 = int_to_ptr.vmem [resolvable:$true] %s2134_s9 }
 0xbf9   :  { %s2889_s14 = scalar_lea.vmem %s2115_s16, 64  ;;  %p2894_p6 = scmp.lt.s32.totalorder %s2115_s16, %s2115_s16 }
 0xbfa   :  { %p2890_p5 = scmp.ne.s32.totalorder %s2115_s16, %s2889_s14  ;;  %p2895_p7 = scmp.lt.s32.totalorder %s2889_s14, %s2889_s14 }
 0xbfc   :  { %p2896_p8 = por %p2895_p7, %p2894_p6 }
 0xbfe   :  { %p2897_p9 = pnand %p2896_p8, %p2890_p5 }
 0xc00   :  { %2900 = shalt.err (!%p2897_p9)
}
 0xc01   :  { %s2901_s4 = scalar_lea.hbm %s4212_s17, 64 }
 0xc02   :  { %p2902_p10 = scmp.ne.s32.totalorder %s4212_s17, %s2901_s4  ;;  %p2905_p11 = scmp.lt.u32.totalorder %s2901_s4, %s4212_s17 }
 0xc04   :  { %p2907_p12 = pnand %p2905_p11, %p2902_p10 }
 0xc06   :  { %2910 = shalt.err (!%p2907_p12)
}
 0xc07   :  { %2117 = dma.vmem_to_hbm [thread:$0]  %s2115_s16, 64, %s4212_s17, [#allocation5]  }
 0xc08   :  { %s2911_s18 = scalar_lea.vmem %s2135_s9, 64  ;;  %p2916_p0 = scmp.lt.s32.totalorder %s2135_s9, %s2135_s9 }
 0xc09   :  { %p2912_p13 = scmp.ne.s32.totalorder %s2135_s9, %s2911_s18  ;;  %p2917_p1 = scmp.lt.s32.totalorder %s2911_s18, %s2911_s18 }
 0xc0b   :  { %p2918_p2 = por %p2917_p1, %p2916_p0 }
 0xc0d   :  { %p2919_p3 = pnand %p2918_p2, %p2912_p13 }
 0xc0f   :  { %2922 = shalt.err (!%p2919_p3)
}
 0xc10   :  { %s2923_s8 = scalar_lea.hbm %s4214_s19, 64 }
 0xc11   :  { %p2924_p4 = scmp.ne.s32.totalorder %s4214_s19, %s2923_s8  ;;  %p2927_p5 = scmp.lt.u32.totalorder %s2923_s8, %s4214_s19 }
 0xc13   :  { %p2929_p6 = pnand %p2927_p5, %p2924_p4 }
 0xc15   :  { %2932 = shalt.err (!%p2929_p6)
}
 0xc16   :  { %2137 = dma.vmem_to_hbm [thread:$0]  %s2135_s9, 64, %s4214_s19, [#allocation8]  }
 0xc17   :  { %s3035_s24 = smov [#allocation12]  }
 0xc18   :  { %s2154_s2 = sshll.u32 %s3035_s24, 4  ;;  %s2155_s2 = int_to_ptr.vmem [resolvable:$true] %s2154_s2 }
 0xc19   :  { %s2933_s25 = scalar_lea.vmem %s2155_s2, 64  ;;  %p2938_p8 = scmp.lt.s32.totalorder %s2155_s2, %s2155_s2 }
 0xc1a   :  { %p2934_p7 = scmp.ne.s32.totalorder %s2155_s2, %s2933_s25  ;;  %p2939_p9 = scmp.lt.s32.totalorder %s2933_s25, %s2933_s25 }
 0xc1c   :  { %p2940_p10 = por %p2939_p9, %p2938_p8 }
 0xc1e   :  { %p2941_p11 = pnand %p2940_p10, %p2934_p7 }
 0xc20   :  { %2944 = shalt.err (!%p2941_p11)
}
 0xc21   :  { %s2945_s12 = scalar_lea.hbm %s4216_s21, 64 }
 0xc22   :  { %p2946_p12 = scmp.ne.s32.totalorder %s4216_s21, %s2945_s12  ;;  %p2949_p13 = scmp.lt.u32.totalorder %s2945_s12, %s4216_s21 }
 0xc24   :  { %p2951_p0 = pnand %p2949_p13, %p2946_p12 }
 0xc26   :  { %2954 = shalt.err (!%p2951_p0)
}
 0xc27   :  { %2157 = dma.vmem_to_hbm [thread:$0]  %s2155_s2, 64, %s4216_s21, [#allocation11]  }
 0xc28   :  { %2987 = dma.done.wait [#allocation3], 64  }
 0xc29   :  { %2988 = vsyncadd [#allocation3], 4294967232 }
 0xc2a   :  { %2989 = dma.done.wait [#allocation5], 128  }
 0xc2b   :  { %2990 = vsyncadd [#allocation5], 4294967168 }
 0xc2c   :  { %2991 = dma.done.wait [#allocation8], 128  }
 0xc2d   :  { %2992 = vsyncadd [#allocation8], 4294967168 }
 0xc2e   :  { %2993 = dma.done.wait [#allocation11], 128  }
 0xc2f   :  { %2994 = vsyncadd [#allocation11], 4294967168 }
 0xc30   :  { %2181 = vsyncpa [#allocation3], 1 }
 0xc31   :  { %2182 = vsyncpa [#allocation5], 1 }
 0xc32   :  { %2183 = vsyncpa [#allocation8], 1 }
 0xc33   :  { %2184 = vsyncpa [#allocation11], 1 }

</bundles_post_ra>
